<compile_context>
chip_gen: v7x
topology: tpu7x:2x2x1
jax: 0.10.0
libtpu: 0.0.40
codegen_flags: <defaults>
</compile_context>

<pallas_src>
import math
import functools
from types import SimpleNamespace

import numpy as np
import jax
import jax.numpy as jnp
from jax import lax
from jax.experimental import pallas as pl
from jax.experimental.pallas import tpu as pltpu


# ----------------------------- fused kernel -----------------------------

def _layernorm(x, g, b, eps=1e-5):
    mu = jnp.mean(x, axis=-1, keepdims=True)
    xc = x - mu
    var = jnp.mean(xc * xc, axis=-1, keepdims=True)
    return xc * lax.rsqrt(var + eps) * g + b


def _fused_forecast_kernel(
        patches_ref,      # (bt*Lk, patch_size)   bf16
        xq_ref,           # (bt*V,  seq_len)      bf16
        w_ref,            # (NW, maxK, maxN)      bf16  padded weight slab
        c_ref,            # (NC, maxN)            f32   bias / LN / pos slab
        m_ref,            # (H*bt*V, D + bt*Lk)   f32   [head mask | attn bias]
        o_ref,            # (bt*V, pred_len)      f32
        *, n_heads, n_layers, d_model, d_ff, patch_size, seq_len, pred_len,
        bt, n_vars, lk):
    f32 = jnp.float32
    bf16 = jnp.bfloat16
    D = d_model
    dk = D // n_heads
    lq = n_vars
    btlq = bt * lq
    scale = 1.0 / math.sqrt(dk)

    def W(i, k, n):                      # static slice into the padded weight slab
        return w_ref[i, :k, :n]

    def C(i, n):                         # (1, n) broadcastable constant row
        return c_ref[i:i + 1, :n]

    def mm(a, w):                        # bf16 MXU operands, fp32 accumulation
        return jnp.dot(a.astype(bf16), w, preferred_element_type=f32)

    head_mask = m_ref[:, :D]             # (H*btlq, D)
    attn_bias = m_ref[:, D:]             # (H*btlq, bt*lk)

    # key/value path: patch embedding
    x_k = mm(patches_ref[...], W(0, patch_size, D)) + C(0, D)        # (bt*lk, D)
    x_k16 = x_k.astype(bf16)                                         # cast once

    # query path: Linear(seq_len -> D) + (positional embedding + lin bias)
    posb = c_ref[2:2 + n_vars, :D]                                   # (V, D)
    posb = jnp.concatenate([posb] * bt, axis=0)                      # (btlq, D)
    h = mm(xq_ref[...], W(1, seq_len, D)) + posb                     # (btlq, D) f32

    for l in range(n_layers):
        wb = 3 + 6 * l
        cb = 2 + n_vars + 10 * l

        q = mm(h, W(wb + 0, D, D)) + C(cb + 0, D)                    # (btlq, D)
        k = mm(x_k16, W(wb + 1, D, D)) + C(cb + 1, D)                # (bt*lk, D)
        v = mm(x_k16, W(wb + 2, D, D)) + C(cb + 2, D)                # (bt*lk, D)

        # replicate q per head along sublanes, mask non-head columns
        q_rep = jnp.concatenate([q] * n_heads, axis=0)               # (H*btlq, D)
        qm = (q_rep * head_mask).astype(bf16)

        # one score matmul for all heads / all stacked batches
        s = lax.dot_general(qm, k.astype(bf16), (((1,), (1,)), ((), ())),
                            preferred_element_type=f32) * scale
        s = s + attn_bias                                            # (H*btlq, bt*lk)
        m_max = jnp.max(s, axis=-1, keepdims=True)
        p = jnp.exp(s - m_max)
        inv = pl.reciprocal(jnp.sum(p, axis=-1, keepdims=True), approx=True)
        p = p * inv

        o = jnp.dot(p.astype(bf16), v.astype(bf16),
                    preferred_element_type=f32)                      # (H*btlq, D)
        o = o * head_mask
        attn = o[0:btlq, :]
        for hh in range(1, n_heads):                                 # fold head blocks
            attn = attn + o[hh * btlq:(hh + 1) * btlq, :]
        attn = mm(attn, W(wb + 3, D, D)) + C(cb + 3, D)

        y = _layernorm(h + attn, C(cb + 6, D), C(cb + 7, D))         # post-LN
        ff = jnp.maximum(mm(y, W(wb + 4, D, d_ff)) + C(cb + 4, d_ff), 0.0)
        ff = mm(ff, W(wb + 5, d_ff, D)) + C(cb + 5, D)
        h = _layernorm(y + ff, C(cb + 8, D), C(cb + 9, D))

    # output projection; transpose + de-normalization happen in the XLA epilogue
    o_ref[...] = mm(h, W(2, D, pred_len)) + C(1, pred_len)           # (btlq, pred_len)


# ----------------------------- parameter init / slab packing -----------------------------

def _init_linear(key, fan_in, fan_out):
    k1, k2 = jax.random.split(key)
    bound = 1.0 / math.sqrt(fan_in)
    w = jax.random.uniform(k1, (fan_in, fan_out), jnp.float32, -bound, bound)
    b = jax.random.uniform(k2, (fan_out,), jnp.float32, -bound, bound)
    return np.asarray(w), np.asarray(b)


def _sinusoidal_pe(max_len, d_model):
    position = np.arange(max_len, dtype=np.float32)[:, None]
    div_term = np.exp(np.arange(0, d_model, 2, dtype=np.float32)
                      * -(math.log(10000.0) / d_model))
    pe = np.zeros((max_len, d_model), np.float32)
    pe[:, 0::2] = np.sin(position * div_term)
    pe[:, 1::2] = np.cos(position * div_term)
    return pe


def init_params(key, cfg):
    NW = 3 + 6 * cfg.num_e_layers
    NC = 2 + cfg.enc_in + 10 * cfg.num_e_layers
    maxK = max(cfg.patch_size, cfg.seq_len, cfg.d_model, cfg.d_ff)
    maxN = max(cfg.d_model, cfg.d_ff, cfg.pred_len)

    w_np = np.zeros((NW, maxK, maxN), np.float32)
    c_np = np.zeros((NC, maxN), np.float32)

    def put_w(i, w): w_np[i, :w.shape[0], :w.shape[1]] = w
    def put_c(i, v): c_np[i, :v.shape[0]] = v

    keys = jax.random.split(key, 3 + cfg.num_e_layers)
    emb_w, emb_b = _init_linear(keys[0], cfg.patch_size, cfg.d_model)
    lin_w, lin_b = _init_linear(keys[1], cfg.seq_len, cfg.d_model)
    out_w, out_b = _init_linear(keys[2], cfg.d_model, cfg.pred_len)
    put_w(0, emb_w); put_w(1, lin_w); put_w(2, out_w)
    put_c(0, emb_b); put_c(1, out_b)

    pos = _sinusoidal_pe(512, cfg.d_model)[:cfg.enc_in]              # (V, D)
    for vi in range(cfg.enc_in):
        put_c(2 + vi, pos[vi] + lin_b)                               # pos + lin bias fused

    for li in range(cfg.num_e_layers):
        lk_ = jax.random.split(keys[3 + li], 6)
        wq, bq = _init_linear(lk_[0], cfg.d_model, cfg.d_model)
        wk, bk = _init_linear(lk_[1], cfg.d_model, cfg.d_model)
        wv, bv = _init_linear(lk_[2], cfg.d_model, cfg.d_model)
        wo, bo = _init_linear(lk_[3], cfg.d_model, cfg.d_model)
        w1, b1 = _init_linear(lk_[4], cfg.d_model, cfg.d_ff)
        w2, b2 = _init_linear(lk_[5], cfg.d_ff, cfg.d_model)
        wb = 3 + 6 * li
        cb = 2 + cfg.enc_in + 10 * li
        put_w(wb + 0, wq); put_w(wb + 1, wk); put_w(wb + 2, wv)
        put_w(wb + 3, wo); put_w(wb + 4, w1); put_w(wb + 5, w2)
        put_c(cb + 0, bq); put_c(cb + 1, bk); put_c(cb + 2, bv); put_c(cb + 3, bo)
        put_c(cb + 4, b1); put_c(cb + 5, b2)
        put_c(cb + 6, np.ones(cfg.d_model, np.float32))   # ln1 gamma
        put_c(cb + 7, np.zeros(cfg.d_model, np.float32))  # ln1 beta
        put_c(cb + 8, np.ones(cfg.d_model, np.float32))   # ln2 gamma
        put_c(cb + 9, np.zeros(cfg.d_model, np.float32))  # ln2 beta

    return {
        'w_slab': jnp.asarray(w_np).astype(jnp.bfloat16),   # one bf16 weight slab
        'c_slab': jnp.asarray(c_np),                         # one fp32 constant slab
    }


def _build_mask_slab(n_heads, bt, lq, lk, d_model):
    """[head column mask | additive attention bias], fp32, compile-time constant."""
    dk = d_model // n_heads
    rows = n_heads * bt * lq
    r = np.arange(rows)
    head_of_r = r // (bt * lq)
    b_of_r = (r % (bt * lq)) // lq
    q_of_r = r % lq
    d = np.arange(d_model)
    head_mask = (head_of_r[:, None] == d[None, :] // dk).astype(np.float32)
    c = np.arange(bt * lk)
    b_of_c = c // lk
    k_of_c = c % lk
    # TODO(synk): reference FullAttention(mask=True) semantics for cross-attention
    # (Lq != Lk) are ambiguous; the causal-style mask (key index <= query index) of
    # the previous validated implementation is kept.  Cross-batch entries of the
    # row-stacked score matrix are always masked out.
    allowed = (b_of_c[None, :] == b_of_r[:, None]) & (k_of_c[None, :] <= q_of_r[:, None])
    bias = np.where(allowed, 0.0, -1e30).astype(np.float32)
    return jnp.asarray(np.concatenate([head_mask, bias], axis=1))


# ----------------------------- forward (forecast) -----------------------------

def patch2_forward(params, cfg, x, x_stamp, y, y_stamp, batch_tile=8):
    assert cfg.task == 'forecast'
    B, L, V = x.shape
    D = cfg.d_model
    Lk = V * cfg.num_patches

    # instance normalization over time (torch.var is unbiased)
    mean = jnp.mean(x, axis=1, keepdims=True)                            # (B,1,V)
    xc = x - mean
    stdev = jnp.sqrt(jnp.var(xc, axis=1, keepdims=True, ddof=1) + 1e-5)  # (B,1,V)
    xn = xc / stdev

    # patching (pure data movement; stays in the XLA prologue)
    xv = xn.transpose(0, 2, 1)                                           # (B,V,L)
    pad = jnp.repeat(xv[..., -1:], cfg.padding, axis=-1)                 # replication pad
    xp = jnp.concatenate([xv, pad], axis=-1)                             # (B,V,L+pad)
    starts = np.arange(cfg.num_patches) * cfg.stride
    idx = starts[:, None] + np.arange(cfg.patch_size)[None, :]           # (N,P)
    patches = xp[:, :, idx].reshape(B, Lk, cfg.patch_size)               # (B,Lk,P)

    # batch tiling: bt elements row-stacked per grid step
    bt = min(batch_tile, B)
    n_steps = -(-B // bt)
    if n_steps > 1:                       # keep per-step row counts sublane-aligned
        row_align = 8 // math.gcd(V, 8)
        bt = -(-bt // row_align) * row_align
        n_steps = -(-B // bt)
    Bp = n_steps * bt
    if Bp != B:
        patches = jnp.pad(patches, ((0, Bp - B), (0, 0), (0, 0)))
        xv = jnp.pad(xv, ((0, Bp - B), (0, 0), (0, 0)))

    patches_flat = patches.reshape(Bp * Lk, cfg.patch_size).astype(jnp.bfloat16)
    xq_flat = xv.reshape(Bp * V, L).astype(jnp.bfloat16)
    msk = _build_mask_slab(cfg.n_heads, bt, V, Lk, D)    # baked compile-time constant

    kernel = functools.partial(
        _fused_forecast_kernel,
        n_heads=cfg.n_heads, n_layers=cfg.num_e_layers, d_model=D,
        d_ff=cfg.d_ff, patch_size=cfg.patch_size, seq_len=L,
        pred_len=cfg.pred_len, bt=bt, n_vars=V, lk=Lk)

    out_flat = pl.pallas_call(
        kernel,
        grid=(n_steps,),
        in_specs=[
            pl.BlockSpec((bt * Lk, cfg.patch_size), lambda i: (i, 0)),
            pl.BlockSpec((bt * V, L), lambda i: (i, 0)),
            pl.BlockSpec(params['w_slab'].shape, lambda i: (0, 0, 0)),
            pl.BlockSpec(params['c_slab'].shape, lambda i: (0, 0)),
            pl.BlockSpec(msk.shape, lambda i: (0, 0)),
        ],
        out_specs=pl.BlockSpec((bt * V, cfg.pred_len), lambda i: (i, 0)),
        out_shape=jax.ShapeDtypeStruct((Bp * V, cfg.pred_len), jnp.float32),
        compiler_params=pltpu.CompilerParams(
            dimension_semantics=("parallel",)),   # v7x: batch tiles shard over 2 TCs
    )(patches_flat, xq_flat, params['w_slab'], params['c_slab'], msk)

    # epilogue: tiny transpose + de-normalization (kept out of the kernel so the
    # final store stays simple and no in-kernel XLU transpose is needed)
    out = out_flat.reshape(Bp, V, cfg.pred_len)[:B].transpose(0, 2, 1)   # (B,pred,V)
    out = out * stdev + mean
    att = None  # FullAttention(out_attention=False): attention maps not returned
    return out, att


# ----------------------------- driver -----------------------------

if __name__ == "__main__":
    cfg = SimpleNamespace(
        task='forecast',
        seq_len=96,            # fixed by nn.Linear(96, d_model) in the module
        pred_len=8,
        patch_size=16,
        stride=8,
        padding=8,
        d_model=32,
        n_heads=4,
        d_ff=64,
        ff_type='linear',
        num_e_layers=2,
        enc_in=4,
    )
    cfg.num_patches = int((cfg.seq_len - cfg.patch_size) / cfg.stride + 2)  # 12

    key = jax.random.PRNGKey(0)
    kx, kxs, ky, kys, kp = jax.random.split(key, 5)
    B, V = 2, cfg.enc_in
    x = jax.random.normal(kx, (B, cfg.seq_len, V), jnp.float32)
    x_stamp = jax.random.normal(kxs, (B, cfg.seq_len, V), jnp.float32)   # unused
    y = jax.random.normal(ky, (B, cfg.pred_len, V), jnp.float32)         # unused
    y_stamp = jax.random.normal(kys, (B, cfg.pred_len, V), jnp.float32)  # unused

    params = init_params(kp, cfg)

    fwd = jax.jit(lambda p, a, b_, c, d: patch2_forward(p, cfg, a, b_, c, d))
    out, att = fwd(params, x, x_stamp, y, y_stamp)
    out = jax.block_until_ready(out)
    assert out.shape == (B, cfg.pred_len, V)
    assert bool(jnp.all(jnp.isfinite(out)))
    print("KERNEL_OK")
</pallas_src>

<mosaic_0001>
module attributes {stable_mosaic.version = 11 : i64} {
  func.func @_fused_forecast_kernel(%arg0: i32, %arg1: memref<96x16xbf16, #tpu.memory_space<vmem>>, %arg2: memref<8x96xbf16, #tpu.memory_space<vmem>>, %arg3: memref<15x96x64xbf16, #tpu.memory_space<vmem>>, %arg4: memref<26x64xf32, #tpu.memory_space<vmem>>, %arg5: memref<32x128xf32, #tpu.memory_space<vmem>>, %arg6: memref<8x8xf32, #tpu.memory_space<vmem>>) attributes {dimension_semantics = [#tpu.dimension_semantics<parallel>], iteration_bounds = array<i64: 1>, scalar_prefetch = 0 : i64, scratch_operands = 0 : i64, tpu.core_type = #tpu.core_type<tc>, window_params = [{transform_indices = @transform_0, window_bounds = array<i64: 96, 16>}, {transform_indices = @transform_1, window_bounds = array<i64: 8, 96>}, {pipeline_mode = #tpu.pipeline_mode<synchronous>, transform_indices = @transform_2, window_bounds = array<i64: 15, 96, 64>}, {pipeline_mode = #tpu.pipeline_mode<synchronous>, transform_indices = @transform_3, window_bounds = array<i64: 26, 64>}, {pipeline_mode = #tpu.pipeline_mode<synchronous>, transform_indices = @transform_4, window_bounds = array<i64: 32, 128>}, {transform_indices = @transform_5, window_bounds = array<i64: 8, 8>}]} {
    %c0 = arith.constant 0 : index
    %c0_0 = arith.constant 0 : index
    %0 = vector.load %arg5[%c0, %c0_0] : memref<32x128xf32, #tpu.memory_space<vmem>>, vector<32x32xf32>
    %c0_1 = arith.constant 0 : index
    %c32 = arith.constant 32 : index
    %1 = vector.load %arg5[%c0_1, %c32] : memref<32x128xf32, #tpu.memory_space<vmem>>, vector<32x96xf32>
    %c0_2 = arith.constant 0 : index
    %c0_3 = arith.constant 0 : index
    %2 = vector.load %arg1[%c0_2, %c0_3] : memref<96x16xbf16, #tpu.memory_space<vmem>>, vector<96x16xbf16>
    %c0_4 = arith.constant 0 : index
    %c0_5 = arith.constant 0 : index
    %c0_6 = arith.constant 0 : index
    %3 = vector.load %arg3[%c0_4, %c0_5, %c0_6] : memref<15x96x64xbf16, #tpu.memory_space<vmem>>, vector<1x16x32xbf16>
    %4 = vector.shape_cast %3 : vector<1x16x32xbf16> to vector<16x32xbf16>
    %cst = arith.constant dense<0.000000e+00> : vector<96x32xf32>
    %5 = tpu.matmul %2, %4, %cst {dimension_numbers = #tpu.dot_dimension_numbers<[1], [0], [0], [1], [0, 0, 1, 1], [], []>} : vector<96x16xbf16>, vector<16x32xbf16>, vector<96x32xf32> -> vector<96x32xf32>
    %c0_7 = arith.constant 0 : index
    %c0_8 = arith.constant 0 : index
    %6 = vector.load %arg4[%c0_7, %c0_8] : memref<26x64xf32, #tpu.memory_space<vmem>>, vector<1x32xf32>
    %7 = vector.broadcast %6 : vector<1x32xf32> to vector<96x32xf32>
    %8 = arith.addf %5, %7 : vector<96x32xf32>
    %9 = arith.truncf %8 : vector<96x32xf32> to vector<96x32xbf16>
    %c2 = arith.constant 2 : index
    %c0_9 = arith.constant 0 : index
    %10 = vector.load %arg4[%c2, %c0_9] : memref<26x64xf32, #tpu.memory_space<vmem>>, vector<4x32xf32>
    %11 = tpu.concatenate %10, %10 in 0 : vector<4x32xf32>, vector<4x32xf32> -> vector<8x32xf32>
    %c0_10 = arith.constant 0 : index
    %c0_11 = arith.constant 0 : index
    %12 = vector.load %arg2[%c0_10, %c0_11] : memref<8x96xbf16, #tpu.memory_space<vmem>>, vector<8x96xbf16>
    %c1 = arith.constant 1 : index
    %c0_12 = arith.constant 0 : index
    %c0_13 = arith.constant 0 : index
    %13 = vector.load %arg3[%c1, %c0_12, %c0_13] : memref<15x96x64xbf16, #tpu.memory_space<vmem>>, vector<1x96x32xbf16>
    %14 = vector.shape_cast %13 : vector<1x96x32xbf16> to vector<96x32xbf16>
    %cst_14 = arith.constant dense<0.000000e+00> : vector<8x32xf32>
    %15 = tpu.matmul %12, %14, %cst_14 {dimension_numbers = #tpu.dot_dimension_numbers<[1], [0], [0], [1], [0, 0, 1, 1], [], []>} : vector<8x96xbf16>, vector<96x32xbf16>, vector<8x32xf32> -> vector<8x32xf32>
    %16 = arith.addf %15, %11 : vector<8x32xf32>
    %c3 = arith.constant 3 : index
    %c0_15 = arith.constant 0 : index
    %c0_16 = arith.constant 0 : index
    %17 = vector.load %arg3[%c3, %c0_15, %c0_16] : memref<15x96x64xbf16, #tpu.memory_space<vmem>>, vector<1x32x32xbf16>
    %18 = vector.shape_cast %17 : vector<1x32x32xbf16> to vector<32x32xbf16>
    %19 = arith.truncf %16 : vector<8x32xf32> to vector<8x32xbf16>
    %cst_17 = arith.constant dense<0.000000e+00> : vector<8x32xf32>
    %20 = tpu.matmul %19, %18, %cst_17 {dimension_numbers = #tpu.dot_dimension_numbers<[1], [0], [0], [1], [0, 0, 1, 1], [], []>} : vector<8x32xbf16>, vector<32x32xbf16>, vector<8x32xf32> -> vector<8x32xf32>
    %c6 = arith.constant 6 : index
    %c0_18 = arith.constant 0 : index
    %21 = vector.load %arg4[%c6, %c0_18] : memref<26x64xf32, #tpu.memory_space<vmem>>, vector<1x32xf32>
    %22 = vector.broadcast %21 : vector<1x32xf32> to vector<8x32xf32>
    %23 = arith.addf %20, %22 : vector<8x32xf32>
    %c4 = arith.constant 4 : index
    %c0_19 = arith.constant 0 : index
    %c0_20 = arith.constant 0 : index
    %24 = vector.load %arg3[%c4, %c0_19, %c0_20] : memref<15x96x64xbf16, #tpu.memory_space<vmem>>, vector<1x32x32xbf16>
    %25 = vector.shape_cast %24 : vector<1x32x32xbf16> to vector<32x32xbf16>
    %cst_21 = arith.constant dense<0.000000e+00> : vector<96x32xf32>
    %26 = tpu.matmul %9, %25, %cst_21 {dimension_numbers = #tpu.dot_dimension_numbers<[1], [0], [0], [1], [0, 0, 1, 1], [], []>} : vector<96x32xbf16>, vector<32x32xbf16>, vector<96x32xf32> -> vector<96x32xf32>
    %c7 = arith.constant 7 : index
    %c0_22 = arith.constant 0 : index
    %27 = vector.load %arg4[%c7, %c0_22] : memref<26x64xf32, #tpu.memory_space<vmem>>, vector<1x32xf32>
    %28 = vector.broadcast %27 : vector<1x32xf32> to vector<96x32xf32>
    %29 = arith.addf %26, %28 : vector<96x32xf32>
    %c5 = arith.constant 5 : index
    %c0_23 = arith.constant 0 : index
    %c0_24 = arith.constant 0 : index
    %30 = vector.load %arg3[%c5, %c0_23, %c0_24] : memref<15x96x64xbf16, #tpu.memory_space<vmem>>, vector<1x32x32xbf16>
    %31 = vector.shape_cast %30 : vector<1x32x32xbf16> to vector<32x32xbf16>
    %cst_25 = arith.constant dense<0.000000e+00> : vector<96x32xf32>
    %32 = tpu.matmul %9, %31, %cst_25 {dimension_numbers = #tpu.dot_dimension_numbers<[1], [0], [0], [1], [0, 0, 1, 1], [], []>} : vector<96x32xbf16>, vector<32x32xbf16>, vector<96x32xf32> -> vector<96x32xf32>
    %c8 = arith.constant 8 : index
    %c0_26 = arith.constant 0 : index
    %33 = vector.load %arg4[%c8, %c0_26] : memref<26x64xf32, #tpu.memory_space<vmem>>, vector<1x32xf32>
    %34 = vector.broadcast %33 : vector<1x32xf32> to vector<96x32xf32>
    %35 = arith.addf %32, %34 : vector<96x32xf32>
    %36 = tpu.concatenate %23, %23, %23, %23 in 0 : vector<8x32xf32>, vector<8x32xf32>, vector<8x32xf32>, vector<8x32xf32> -> vector<32x32xf32>
    %37 = arith.mulf %36, %0 : vector<32x32xf32>
    %38 = arith.truncf %37 : vector<32x32xf32> to vector<32x32xbf16>
    %39 = arith.truncf %29 : vector<96x32xf32> to vector<96x32xbf16>
    %cst_27 = arith.constant dense<0.000000e+00> : vector<32x96xf32>
    %40 = tpu.matmul %38, %39, %cst_27 {dimension_numbers = #tpu.dot_dimension_numbers<[1], [1], [0], [0], [0, 0, 1, 0], [], []>} : vector<32x32xbf16>, vector<96x32xbf16>, vector<32x96xf32> -> vector<32x96xf32>
    %cst_28 = arith.constant 0.353553385 : f32
    %41 = vector.broadcast %cst_28 : f32 to vector<32x96xf32>
    %42 = arith.mulf %40, %41 : vector<32x96xf32>
    %43 = arith.addf %42, %1 : vector<32x96xf32>
    %cst_29 = arith.constant dense<0xFF800000> : vector<32xf32>
    %44 = vector.multi_reduction <maximumf>, %43, %cst_29 [1] : vector<32x96xf32> to vector<32xf32>
    %45 = vector.shape_cast %44 : vector<32xf32> to vector<32x1xf32>
    %46 = vector.broadcast %45 : vector<32x1xf32> to vector<32x96xf32>
    %47 = arith.subf %43, %46 : vector<32x96xf32>
    %48 = math.exp %47 : vector<32x96xf32>
    %cst_30 = arith.constant dense<0.000000e+00> : vector<32xf32>
    %49 = vector.multi_reduction <add>, %48, %cst_30 [1] : vector<32x96xf32> to vector<32xf32>
    %50 = vector.shape_cast %49 : vector<32xf32> to vector<32x1xf32>
    %51 = tpu.reciprocal %50 {approx = true} : vector<32x1xf32> -> vector<32x1xf32>
    %52 = vector.broadcast %51 : vector<32x1xf32> to vector<32x96xf32>
    %53 = arith.mulf %48, %52 : vector<32x96xf32>
    %54 = arith.truncf %53 : vector<32x96xf32> to vector<32x96xbf16>
    %55 = arith.truncf %35 : vector<96x32xf32> to vector<96x32xbf16>
    %cst_31 = arith.constant dense<0.000000e+00> : vector<32x32xf32>
    %56 = tpu.matmul %54, %55, %cst_31 {dimension_numbers = #tpu.dot_dimension_numbers<[1], [0], [0], [1], [0, 0, 1, 1], [], []>} : vector<32x96xbf16>, vector<96x32xbf16>, vector<32x32xf32> -> vector<32x32xf32>
    %57 = arith.mulf %56, %0 : vector<32x32xf32>
    %58 = vector.extract_strided_slice %57 {offsets = [0, 0], sizes = [8, 32], strides = [1, 1]} : vector<32x32xf32> to vector<8x32xf32>
    %59 = vector.extract_strided_slice %57 {offsets = [8, 0], sizes = [8, 32], strides = [1, 1]} : vector<32x32xf32> to vector<8x32xf32>
    %60 = arith.addf %58, %59 : vector<8x32xf32>
    %61 = vector.extract_strided_slice %57 {offsets = [16, 0], sizes = [8, 32], strides = [1, 1]} : vector<32x32xf32> to vector<8x32xf32>
    %62 = arith.addf %60, %61 : vector<8x32xf32>
    %63 = vector.extract_strided_slice %57 {offsets = [24, 0], sizes = [8, 32], strides = [1, 1]} : vector<32x32xf32> to vector<8x32xf32>
    %64 = arith.addf %62, %63 : vector<8x32xf32>
    %c6_32 = arith.constant 6 : index
    %c0_33 = arith.constant 0 : index
    %c0_34 = arith.constant 0 : index
    %65 = vector.load %arg3[%c6_32, %c0_33, %c0_34] : memref<15x96x64xbf16, #tpu.memory_space<vmem>>, vector<1x32x32xbf16>
    %66 = vector.shape_cast %65 : vector<1x32x32xbf16> to vector<32x32xbf16>
    %67 = arith.truncf %64 : vector<8x32xf32> to vector<8x32xbf16>
    %cst_35 = arith.constant dense<0.000000e+00> : vector<8x32xf32>
    %68 = tpu.matmul %67, %66, %cst_35 {dimension_numbers = #tpu.dot_dimension_numbers<[1], [0], [0], [1], [0, 0, 1, 1], [], []>} : vector<8x32xbf16>, vector<32x32xbf16>, vector<8x32xf32> -> vector<8x32xf32>
    %c9 = arith.constant 9 : index
    %c0_36 = arith.constant 0 : index
    %69 = vector.load %arg4[%c9, %c0_36] : memref<26x64xf32, #tpu.memory_space<vmem>>, vector<1x32xf32>
    %70 = vector.broadcast %69 : vector<1x32xf32> to vector<8x32xf32>
    %71 = arith.addf %68, %70 : vector<8x32xf32>
    %72 = arith.addf %16, %71 : vector<8x32xf32>
    %c12 = arith.constant 12 : index
    %c0_37 = arith.constant 0 : index
    %73 = vector.load %arg4[%c12, %c0_37] : memref<26x64xf32, #tpu.memory_space<vmem>>, vector<1x32xf32>
    %c13 = arith.constant 13 : index
    %c0_38 = arith.constant 0 : index
    %74 = vector.load %arg4[%c13, %c0_38] : memref<26x64xf32, #tpu.memory_space<vmem>>, vector<1x32xf32>
    %cst_39 = arith.constant dense<0.000000e+00> : vector<8xf32>
    %75 = vector.multi_reduction <add>, %72, %cst_39 [1] : vector<8x32xf32> to vector<8xf32>
    %76 = vector.shape_cast %75 : vector<8xf32> to vector<8x1xf32>
    %cst_40 = arith.constant 3.200000e+01 : f32
    %77 = vector.broadcast %cst_40 : f32 to vector<8x1xf32>
    %78 = arith.divf %76, %77 : vector<8x1xf32>
    %79 = vector.broadcast %78 : vector<8x1xf32> to vector<8x32xf32>
    %80 = arith.subf %72, %79 : vector<8x32xf32>
    %81 = arith.mulf %80, %80 : vector<8x32xf32>
    %cst_41 = arith.constant dense<0.000000e+00> : vector<8xf32>
    %82 = vector.multi_reduction <add>, %81, %cst_41 [1] : vector<8x32xf32> to vector<8xf32>
    %83 = vector.shape_cast %82 : vector<8xf32> to vector<8x1xf32>
    %cst_42 = arith.constant 3.200000e+01 : f32
    %84 = vector.broadcast %cst_42 : f32 to vector<8x1xf32>
    %85 = arith.divf %83, %84 : vector<8x1xf32>
    %cst_43 = arith.constant 9.99999974E-6 : f32
    %86 = vector.broadcast %cst_43 : f32 to vector<8x1xf32>
    %87 = arith.addf %85, %86 : vector<8x1xf32>
    %88 = math.rsqrt %87 : vector<8x1xf32>
    %89 = vector.broadcast %88 : vector<8x1xf32> to vector<8x32xf32>
    %90 = arith.mulf %80, %89 : vector<8x32xf32>
    %91 = vector.broadcast %73 : vector<1x32xf32> to vector<8x32xf32>
    %92 = arith.mulf %90, %91 : vector<8x32xf32>
    %93 = vector.broadcast %74 : vector<1x32xf32> to vector<8x32xf32>
    %94 = arith.addf %92, %93 : vector<8x32xf32>
    %c7_44 = arith.constant 7 : index
    %c0_45 = arith.constant 0 : index
    %c0_46 = arith.constant 0 : index
    %95 = vector.load %arg3[%c7_44, %c0_45, %c0_46] : memref<15x96x64xbf16, #tpu.memory_space<vmem>>, vector<1x32x64xbf16>
    %96 = vector.shape_cast %95 : vector<1x32x64xbf16> to vector<32x64xbf16>
    %97 = arith.truncf %94 : vector<8x32xf32> to vector<8x32xbf16>
    %cst_47 = arith.constant dense<0.000000e+00> : vector<8x64xf32>
    %98 = tpu.matmul %97, %96, %cst_47 {dimension_numbers = #tpu.dot_dimension_numbers<[1], [0], [0], [1], [0, 0, 1, 1], [], []>} : vector<8x32xbf16>, vector<32x64xbf16>, vector<8x64xf32> -> vector<8x64xf32>
    %c10 = arith.constant 10 : index
    %c0_48 = arith.constant 0 : index
    %99 = vector.load %arg4[%c10, %c0_48] : memref<26x64xf32, #tpu.memory_space<vmem>>, vector<1x64xf32>
    %100 = vector.broadcast %99 : vector<1x64xf32> to vector<8x64xf32>
    %101 = arith.addf %98, %100 : vector<8x64xf32>
    %cst_49 = arith.constant 0.000000e+00 : f32
    %102 = vector.broadcast %cst_49 : f32 to vector<8x64xf32>
    %103 = arith.maximumf %101, %102 : vector<8x64xf32>
    %c8_50 = arith.constant 8 : index
    %c0_51 = arith.constant 0 : index
    %c0_52 = arith.constant 0 : index
    %104 = vector.load %arg3[%c8_50, %c0_51, %c0_52] : memref<15x96x64xbf16, #tpu.memory_space<vmem>>, vector<1x64x32xbf16>
    %105 = vector.shape_cast %104 : vector<1x64x32xbf16> to vector<64x32xbf16>
    %106 = arith.truncf %103 : vector<8x64xf32> to vector<8x64xbf16>
    %cst_53 = arith.constant dense<0.000000e+00> : vector<8x32xf32>
    %107 = tpu.matmul %106, %105, %cst_53 {dimension_numbers = #tpu.dot_dimension_numbers<[1], [0], [0], [1], [0, 0, 1, 1], [], []>} : vector<8x64xbf16>, vector<64x32xbf16>, vector<8x32xf32> -> vector<8x32xf32>
    %c11 = arith.constant 11 : index
    %c0_54 = arith.constant 0 : index
    %108 = vector.load %arg4[%c11, %c0_54] : memref<26x64xf32, #tpu.memory_space<vmem>>, vector<1x32xf32>
    %109 = vector.broadcast %108 : vector<1x32xf32> to vector<8x32xf32>
    %110 = arith.addf %107, %109 : vector<8x32xf32>
    %111 = arith.addf %94, %110 : vector<8x32xf32>
    %c14 = arith.constant 14 : index
    %c0_55 = arith.constant 0 : index
    %112 = vector.load %arg4[%c14, %c0_55] : memref<26x64xf32, #tpu.memory_space<vmem>>, vector<1x32xf32>
    %c15 = arith.constant 15 : index
    %c0_56 = arith.constant 0 : index
    %113 = vector.load %arg4[%c15, %c0_56] : memref<26x64xf32, #tpu.memory_space<vmem>>, vector<1x32xf32>
    %cst_57 = arith.constant dense<0.000000e+00> : vector<8xf32>
    %114 = vector.multi_reduction <add>, %111, %cst_57 [1] : vector<8x32xf32> to vector<8xf32>
    %115 = vector.shape_cast %114 : vector<8xf32> to vector<8x1xf32>
    %cst_58 = arith.constant 3.200000e+01 : f32
    %116 = vector.broadcast %cst_58 : f32 to vector<8x1xf32>
    %117 = arith.divf %115, %116 : vector<8x1xf32>
    %118 = vector.broadcast %117 : vector<8x1xf32> to vector<8x32xf32>
    %119 = arith.subf %111, %118 : vector<8x32xf32>
    %120 = arith.mulf %119, %119 : vector<8x32xf32>
    %cst_59 = arith.constant dense<0.000000e+00> : vector<8xf32>
    %121 = vector.multi_reduction <add>, %120, %cst_59 [1] : vector<8x32xf32> to vector<8xf32>
    %122 = vector.shape_cast %121 : vector<8xf32> to vector<8x1xf32>
    %cst_60 = arith.constant 3.200000e+01 : f32
    %123 = vector.broadcast %cst_60 : f32 to vector<8x1xf32>
    %124 = arith.divf %122, %123 : vector<8x1xf32>
    %cst_61 = arith.constant 9.99999974E-6 : f32
    %125 = vector.broadcast %cst_61 : f32 to vector<8x1xf32>
    %126 = arith.addf %124, %125 : vector<8x1xf32>
    %127 = math.rsqrt %126 : vector<8x1xf32>
    %128 = vector.broadcast %127 : vector<8x1xf32> to vector<8x32xf32>
    %129 = arith.mulf %119, %128 : vector<8x32xf32>
    %130 = vector.broadcast %112 : vector<1x32xf32> to vector<8x32xf32>
    %131 = arith.mulf %129, %130 : vector<8x32xf32>
    %132 = vector.broadcast %113 : vector<1x32xf32> to vector<8x32xf32>
    %133 = arith.addf %131, %132 : vector<8x32xf32>
    %c9_62 = arith.constant 9 : index
    %c0_63 = arith.constant 0 : index
    %c0_64 = arith.constant 0 : index
    %134 = vector.load %arg3[%c9_62, %c0_63, %c0_64] : memref<15x96x64xbf16, #tpu.memory_space<vmem>>, vector<1x32x32xbf16>
    %135 = vector.shape_cast %134 : vector<1x32x32xbf16> to vector<32x32xbf16>
    %136 = arith.truncf %133 : vector<8x32xf32> to vector<8x32xbf16>
    %cst_65 = arith.constant dense<0.000000e+00> : vector<8x32xf32>
    %137 = tpu.matmul %136, %135, %cst_65 {dimension_numbers = #tpu.dot_dimension_numbers<[1], [0], [0], [1], [0, 0, 1, 1], [], []>} : vector<8x32xbf16>, vector<32x32xbf16>, vector<8x32xf32> -> vector<8x32xf32>
    %c16 = arith.constant 16 : index
    %c0_66 = arith.constant 0 : index
    %138 = vector.load %arg4[%c16, %c0_66] : memref<26x64xf32, #tpu.memory_space<vmem>>, vector<1x32xf32>
    %139 = vector.broadcast %138 : vector<1x32xf32> to vector<8x32xf32>
    %140 = arith.addf %137, %139 : vector<8x32xf32>
    %c10_67 = arith.constant 10 : index
    %c0_68 = arith.constant 0 : index
    %c0_69 = arith.constant 0 : index
    %141 = vector.load %arg3[%c10_67, %c0_68, %c0_69] : memref<15x96x64xbf16, #tpu.memory_space<vmem>>, vector<1x32x32xbf16>
    %142 = vector.shape_cast %141 : vector<1x32x32xbf16> to vector<32x32xbf16>
    %cst_70 = arith.constant dense<0.000000e+00> : vector<96x32xf32>
    %143 = tpu.matmul %9, %142, %cst_70 {dimension_numbers = #tpu.dot_dimension_numbers<[1], [0], [0], [1], [0, 0, 1, 1], [], []>} : vector<96x32xbf16>, vector<32x32xbf16>, vector<96x32xf32> -> vector<96x32xf32>
    %c17 = arith.constant 17 : index
    %c0_71 = arith.constant 0 : index
    %144 = vector.load %arg4[%c17, %c0_71] : memref<26x64xf32, #tpu.memory_space<vmem>>, vector<1x32xf32>
    %145 = vector.broadcast %144 : vector<1x32xf32> to vector<96x32xf32>
    %146 = arith.addf %143, %145 : vector<96x32xf32>
    %c11_72 = arith.constant 11 : index
    %c0_73 = arith.constant 0 : index
    %c0_74 = arith.constant 0 : index
    %147 = vector.load %arg3[%c11_72, %c0_73, %c0_74] : memref<15x96x64xbf16, #tpu.memory_space<vmem>>, vector<1x32x32xbf16>
    %148 = vector.shape_cast %147 : vector<1x32x32xbf16> to vector<32x32xbf16>
    %cst_75 = arith.constant dense<0.000000e+00> : vector<96x32xf32>
    %149 = tpu.matmul %9, %148, %cst_75 {dimension_numbers = #tpu.dot_dimension_numbers<[1], [0], [0], [1], [0, 0, 1, 1], [], []>} : vector<96x32xbf16>, vector<32x32xbf16>, vector<96x32xf32> -> vector<96x32xf32>
    %c18 = arith.constant 18 : index
    %c0_76 = arith.constant 0 : index
    %150 = vector.load %arg4[%c18, %c0_76] : memref<26x64xf32, #tpu.memory_space<vmem>>, vector<1x32xf32>
    %151 = vector.broadcast %150 : vector<1x32xf32> to vector<96x32xf32>
    %152 = arith.addf %149, %151 : vector<96x32xf32>
    %153 = tpu.concatenate %140, %140, %140, %140 in 0 : vector<8x32xf32>, vector<8x32xf32>, vector<8x32xf32>, vector<8x32xf32> -> vector<32x32xf32>
    %154 = arith.mulf %153, %0 : vector<32x32xf32>
    %155 = arith.truncf %154 : vector<32x32xf32> to vector<32x32xbf16>
    %156 = arith.truncf %146 : vector<96x32xf32> to vector<96x32xbf16>
    %cst_77 = arith.constant dense<0.000000e+00> : vector<32x96xf32>
    %157 = tpu.matmul %155, %156, %cst_77 {dimension_numbers = #tpu.dot_dimension_numbers<[1], [1], [0], [0], [0, 0, 1, 0], [], []>} : vector<32x32xbf16>, vector<96x32xbf16>, vector<32x96xf32> -> vector<32x96xf32>
    %cst_78 = arith.constant 0.353553385 : f32
    %158 = vector.broadcast %cst_78 : f32 to vector<32x96xf32>
    %159 = arith.mulf %157, %158 : vector<32x96xf32>
    %160 = arith.addf %159, %1 : vector<32x96xf32>
    %cst_79 = arith.constant dense<0xFF800000> : vector<32xf32>
    %161 = vector.multi_reduction <maximumf>, %160, %cst_79 [1] : vector<32x96xf32> to vector<32xf32>
    %162 = vector.shape_cast %161 : vector<32xf32> to vector<32x1xf32>
    %163 = vector.broadcast %162 : vector<32x1xf32> to vector<32x96xf32>
    %164 = arith.subf %160, %163 : vector<32x96xf32>
    %165 = math.exp %164 : vector<32x96xf32>
    %cst_80 = arith.constant dense<0.000000e+00> : vector<32xf32>
    %166 = vector.multi_reduction <add>, %165, %cst_80 [1] : vector<32x96xf32> to vector<32xf32>
    %167 = vector.shape_cast %166 : vector<32xf32> to vector<32x1xf32>
    %168 = tpu.reciprocal %167 {approx = true} : vector<32x1xf32> -> vector<32x1xf32>
    %169 = vector.broadcast %168 : vector<32x1xf32> to vector<32x96xf32>
    %170 = arith.mulf %165, %169 : vector<32x96xf32>
    %171 = arith.truncf %170 : vector<32x96xf32> to vector<32x96xbf16>
    %172 = arith.truncf %152 : vector<96x32xf32> to vector<96x32xbf16>
    %cst_81 = arith.constant dense<0.000000e+00> : vector<32x32xf32>
    %173 = tpu.matmul %171, %172, %cst_81 {dimension_numbers = #tpu.dot_dimension_numbers<[1], [0], [0], [1], [0, 0, 1, 1], [], []>} : vector<32x96xbf16>, vector<96x32xbf16>, vector<32x32xf32> -> vector<32x32xf32>
    %174 = arith.mulf %173, %0 : vector<32x32xf32>
    %175 = vector.extract_strided_slice %174 {offsets = [0, 0], sizes = [8, 32], strides = [1, 1]} : vector<32x32xf32> to vector<8x32xf32>
    %176 = vector.extract_strided_slice %174 {offsets = [8, 0], sizes = [8, 32], strides = [1, 1]} : vector<32x32xf32> to vector<8x32xf32>
    %177 = arith.addf %175, %176 : vector<8x32xf32>
    %178 = vector.extract_strided_slice %174 {offsets = [16, 0], sizes = [8, 32], strides = [1, 1]} : vector<32x32xf32> to vector<8x32xf32>
    %179 = arith.addf %177, %178 : vector<8x32xf32>
    %180 = vector.extract_strided_slice %174 {offsets = [24, 0], sizes = [8, 32], strides = [1, 1]} : vector<32x32xf32> to vector<8x32xf32>
    %181 = arith.addf %179, %180 : vector<8x32xf32>
    %c12_82 = arith.constant 12 : index
    %c0_83 = arith.constant 0 : index
    %c0_84 = arith.constant 0 : index
    %182 = vector.load %arg3[%c12_82, %c0_83, %c0_84] : memref<15x96x64xbf16, #tpu.memory_space<vmem>>, vector<1x32x32xbf16>
    %183 = vector.shape_cast %182 : vector<1x32x32xbf16> to vector<32x32xbf16>
    %184 = arith.truncf %181 : vector<8x32xf32> to vector<8x32xbf16>
    %cst_85 = arith.constant dense<0.000000e+00> : vector<8x32xf32>
    %185 = tpu.matmul %184, %183, %cst_85 {dimension_numbers = #tpu.dot_dimension_numbers<[1], [0], [0], [1], [0, 0, 1, 1], [], []>} : vector<8x32xbf16>, vector<32x32xbf16>, vector<8x32xf32> -> vector<8x32xf32>
    %c19 = arith.constant 19 : index
    %c0_86 = arith.constant 0 : index
    %186 = vector.load %arg4[%c19, %c0_86] : memref<26x64xf32, #tpu.memory_space<vmem>>, vector<1x32xf32>
    %187 = vector.broadcast %186 : vector<1x32xf32> to vector<8x32xf32>
    %188 = arith.addf %185, %187 : vector<8x32xf32>
    %189 = arith.addf %133, %188 : vector<8x32xf32>
    %c22 = arith.constant 22 : index
    %c0_87 = arith.constant 0 : index
    %190 = vector.load %arg4[%c22, %c0_87] : memref<26x64xf32, #tpu.memory_space<vmem>>, vector<1x32xf32>
    %c23 = arith.constant 23 : index
    %c0_88 = arith.constant 0 : index
    %191 = vector.load %arg4[%c23, %c0_88] : memref<26x64xf32, #tpu.memory_space<vmem>>, vector<1x32xf32>
    %cst_89 = arith.constant dense<0.000000e+00> : vector<8xf32>
    %192 = vector.multi_reduction <add>, %189, %cst_89 [1] : vector<8x32xf32> to vector<8xf32>
    %193 = vector.shape_cast %192 : vector<8xf32> to vector<8x1xf32>
    %cst_90 = arith.constant 3.200000e+01 : f32
    %194 = vector.broadcast %cst_90 : f32 to vector<8x1xf32>
    %195 = arith.divf %193, %194 : vector<8x1xf32>
    %196 = vector.broadcast %195 : vector<8x1xf32> to vector<8x32xf32>
    %197 = arith.subf %189, %196 : vector<8x32xf32>
    %198 = arith.mulf %197, %197 : vector<8x32xf32>
    %cst_91 = arith.constant dense<0.000000e+00> : vector<8xf32>
    %199 = vector.multi_reduction <add>, %198, %cst_91 [1] : vector<8x32xf32> to vector<8xf32>
    %200 = vector.shape_cast %199 : vector<8xf32> to vector<8x1xf32>
    %cst_92 = arith.constant 3.200000e+01 : f32
    %201 = vector.broadcast %cst_92 : f32 to vector<8x1xf32>
    %202 = arith.divf %200, %201 : vector<8x1xf32>
    %cst_93 = arith.constant 9.99999974E-6 : f32
    %203 = vector.broadcast %cst_93 : f32 to vector<8x1xf32>
    %204 = arith.addf %202, %203 : vector<8x1xf32>
    %205 = math.rsqrt %204 : vector<8x1xf32>
    %206 = vector.broadcast %205 : vector<8x1xf32> to vector<8x32xf32>
    %207 = arith.mulf %197, %206 : vector<8x32xf32>
    %208 = vector.broadcast %190 : vector<1x32xf32> to vector<8x32xf32>
    %209 = arith.mulf %207, %208 : vector<8x32xf32>
    %210 = vector.broadcast %191 : vector<1x32xf32> to vector<8x32xf32>
    %211 = arith.addf %209, %210 : vector<8x32xf32>
    %c13_94 = arith.constant 13 : index
    %c0_95 = arith.constant 0 : index
    %c0_96 = arith.constant 0 : index
    %212 = vector.load %arg3[%c13_94, %c0_95, %c0_96] : memref<15x96x64xbf16, #tpu.memory_space<vmem>>, vector<1x32x64xbf16>
    %213 = vector.shape_cast %212 : vector<1x32x64xbf16> to vector<32x64xbf16>
    %214 = arith.truncf %211 : vector<8x32xf32> to vector<8x32xbf16>
    %cst_97 = arith.constant dense<0.000000e+00> : vector<8x64xf32>
    %215 = tpu.matmul %214, %213, %cst_97 {dimension_numbers = #tpu.dot_dimension_numbers<[1], [0], [0], [1], [0, 0, 1, 1], [], []>} : vector<8x32xbf16>, vector<32x64xbf16>, vector<8x64xf32> -> vector<8x64xf32>
    %c20 = arith.constant 20 : index
    %c0_98 = arith.constant 0 : index
    %216 = vector.load %arg4[%c20, %c0_98] : memref<26x64xf32, #tpu.memory_space<vmem>>, vector<1x64xf32>
    %217 = vector.broadcast %216 : vector<1x64xf32> to vector<8x64xf32>
    %218 = arith.addf %215, %217 : vector<8x64xf32>
    %cst_99 = arith.constant 0.000000e+00 : f32
    %219 = vector.broadcast %cst_99 : f32 to vector<8x64xf32>
    %220 = arith.maximumf %218, %219 : vector<8x64xf32>
    %c14_100 = arith.constant 14 : index
    %c0_101 = arith.constant 0 : index
    %c0_102 = arith.constant 0 : index
    %221 = vector.load %arg3[%c14_100, %c0_101, %c0_102] : memref<15x96x64xbf16, #tpu.memory_space<vmem>>, vector<1x64x32xbf16>
    %222 = vector.shape_cast %221 : vector<1x64x32xbf16> to vector<64x32xbf16>
    %223 = arith.truncf %220 : vector<8x64xf32> to vector<8x64xbf16>
    %cst_103 = arith.constant dense<0.000000e+00> : vector<8x32xf32>
    %224 = tpu.matmul %223, %222, %cst_103 {dimension_numbers = #tpu.dot_dimension_numbers<[1], [0], [0], [1], [0, 0, 1, 1], [], []>} : vector<8x64xbf16>, vector<64x32xbf16>, vector<8x32xf32> -> vector<8x32xf32>
    %c21 = arith.constant 21 : index
    %c0_104 = arith.constant 0 : index
    %225 = vector.load %arg4[%c21, %c0_104] : memref<26x64xf32, #tpu.memory_space<vmem>>, vector<1x32xf32>
    %226 = vector.broadcast %225 : vector<1x32xf32> to vector<8x32xf32>
    %227 = arith.addf %224, %226 : vector<8x32xf32>
    %228 = arith.addf %211, %227 : vector<8x32xf32>
    %c24 = arith.constant 24 : index
    %c0_105 = arith.constant 0 : index
    %229 = vector.load %arg4[%c24, %c0_105] : memref<26x64xf32, #tpu.memory_space<vmem>>, vector<1x32xf32>
    %c25 = arith.constant 25 : index
    %c0_106 = arith.constant 0 : index
    %230 = vector.load %arg4[%c25, %c0_106] : memref<26x64xf32, #tpu.memory_space<vmem>>, vector<1x32xf32>
    %cst_107 = arith.constant dense<0.000000e+00> : vector<8xf32>
    %231 = vector.multi_reduction <add>, %228, %cst_107 [1] : vector<8x32xf32> to vector<8xf32>
    %232 = vector.shape_cast %231 : vector<8xf32> to vector<8x1xf32>
    %cst_108 = arith.constant 3.200000e+01 : f32
    %233 = vector.broadcast %cst_108 : f32 to vector<8x1xf32>
    %234 = arith.divf %232, %233 : vector<8x1xf32>
    %235 = vector.broadcast %234 : vector<8x1xf32> to vector<8x32xf32>
    %236 = arith.subf %228, %235 : vector<8x32xf32>
    %237 = arith.mulf %236, %236 : vector<8x32xf32>
    %cst_109 = arith.constant dense<0.000000e+00> : vector<8xf32>
    %238 = vector.multi_reduction <add>, %237, %cst_109 [1] : vector<8x32xf32> to vector<8xf32>
    %239 = vector.shape_cast %238 : vector<8xf32> to vector<8x1xf32>
    %cst_110 = arith.constant 3.200000e+01 : f32
    %240 = vector.broadcast %cst_110 : f32 to vector<8x1xf32>
    %241 = arith.divf %239, %240 : vector<8x1xf32>
    %cst_111 = arith.constant 9.99999974E-6 : f32
    %242 = vector.broadcast %cst_111 : f32 to vector<8x1xf32>
    %243 = arith.addf %241, %242 : vector<8x1xf32>
    %244 = math.rsqrt %243 : vector<8x1xf32>
    %245 = vector.broadcast %244 : vector<8x1xf32> to vector<8x32xf32>
    %246 = arith.mulf %236, %245 : vector<8x32xf32>
    %247 = vector.broadcast %229 : vector<1x32xf32> to vector<8x32xf32>
    %248 = arith.mulf %246, %247 : vector<8x32xf32>
    %249 = vector.broadcast %230 : vector<1x32xf32> to vector<8x32xf32>
    %250 = arith.addf %248, %249 : vector<8x32xf32>
    %c2_112 = arith.constant 2 : index
    %c0_113 = arith.constant 0 : index
    %c0_114 = arith.constant 0 : index
    %251 = vector.load %arg3[%c2_112, %c0_113, %c0_114] : memref<15x96x64xbf16, #tpu.memory_space<vmem>>, vector<1x32x8xbf16>
    %252 = vector.shape_cast %251 : vector<1x32x8xbf16> to vector<32x8xbf16>
    %253 = arith.truncf %250 : vector<8x32xf32> to vector<8x32xbf16>
    %cst_115 = arith.constant dense<0.000000e+00> : vector<8x8xf32>
    %254 = tpu.matmul %253, %252, %cst_115 {dimension_numbers = #tpu.dot_dimension_numbers<[1], [0], [0], [1], [0, 0, 1, 1], [], []>} : vector<8x32xbf16>, vector<32x8xbf16>, vector<8x8xf32> -> vector<8x8xf32>
    %c1_116 = arith.constant 1 : index
    %c0_117 = arith.constant 0 : index
    %255 = vector.load %arg4[%c1_116, %c0_117] : memref<26x64xf32, #tpu.memory_space<vmem>>, vector<1x8xf32>
    %256 = vector.broadcast %255 : vector<1x8xf32> to vector<8x8xf32>
    %257 = arith.addf %254, %256 : vector<8x8xf32>
    %c0_118 = arith.constant 0 : index
    %c0_119 = arith.constant 0 : index
    %258 = vector.load %arg6[%c0_118, %c0_119] : memref<8x8xf32, #tpu.memory_space<vmem>>, vector<8x8xf32>
    tpu.vector_store %arg6[%c0_118, %c0_119], %257 {strides = array<i32>} : memref<8x8xf32, #tpu.memory_space<vmem>>, vector<8x8xf32>,
    return
  }
  func.func @transform_0(%arg0: i32) -> (i32, i32) {
    %c0_i32 = arith.constant 0 : i32
    %c0_i32_0 = arith.constant 0 : i32
    return %arg0, %c0_i32 : i32, i32
  }
  func.func @transform_1(%arg0: i32) -> (i32, i32) {
    %c0_i32 = arith.constant 0 : i32
    %c0_i32_0 = arith.constant 0 : i32
    return %arg0, %c0_i32 : i32, i32
  }
  func.func @transform_2(%arg0: i32) -> (i32, i32, i32) {
    %c0_i32 = arith.constant 0 : i32
    %c0_i32_0 = arith.constant 0 : i32
    %c0_i32_1 = arith.constant 0 : i32
    %c0_i32_2 = arith.constant 0 : i32
    return %c0_i32, %c0_i32_0, %c0_i32_1 : i32, i32, i32
  }
  func.func @transform_3(%arg0: i32) -> (i32, i32) {
    %c0_i32 = arith.constant 0 : i32
    %c0_i32_0 = arith.constant 0 : i32
    %c0_i32_1 = arith.constant 0 : i32
    return %c0_i32, %c0_i32_0 : i32, i32
  }
  func.func @transform_4(%arg0: i32) -> (i32, i32) {
    %c0_i32 = arith.constant 0 : i32
    %c0_i32_0 = arith.constant 0 : i32
    %c0_i32_1 = arith.constant 0 : i32
    return %c0_i32, %c0_i32_0 : i32, i32
  }
  func.func @transform_5(%arg0: i32) -> (i32, i32) {
    %c0_i32 = arith.constant 0 : i32
    %c0_i32_0 = arith.constant 0 : i32
    return %arg0, %c0_i32 : i32, i32
  }
}

</mosaic_0001>

<bundles_post_ra>
// kernel: _lambda_.1
= control target key start
LH: loop header
LB: loop body
LE: loop exit
PB: predicated region body
PF: predicated region fallthrough
CT: control target
= control target key end

     0   :  { %v2517_v0 = vmov 0.0   ;;  %vm2518_vm0 = vmmov 0   ;;  %vm80_vm1 = vcmask 130048   ;;  %vm242_vm2 = vcmask 785408   ;;  %s2519_s14 = smov 96   ;;  %s3006_s2 = inlined_call_operand.vmem [shape: bf16[15,96,64], index: 2, kind: input, shape index: {}]   ;;  %s3007_s0 = inlined_call_operand.vmem [shape: bf16[96,16], index: 0, kind: input, shape index: {}]   ;;  %s3008_s1 = inlined_call_operand.vmem [shape: bf16[8,96], index: 1, kind: input, shape index: {}]   ;;  %s3009_s3 = inlined_call_operand.vmem [shape: f32[26,64], index: 3, kind: input, shape index: {}]   ;;  %s3010_s4 = inlined_call_operand.vmem [shape: f32[32,128], index: 4, kind: input, shape index: {}]   ;;  %s3011_s5 = inlined_call_operand.vmem [shape: f32[8,8], index: 5, kind: output, shape index: {}]  }
   0x1   :  { %2195 = vmatprep.subr.bf16.mxu1 %v2517_v0  ;;  %v2434_v1 = vld [vmem:[%s3006_s2] sm:$0xff]   ;;  %2207 = vmatprep.mubr.msk.bf16.mxu1 %vm2518_vm0, %v2517_v0  ;;  %v2435_v2 = vld [vmem:[%s3006_s2 + $0x30] sm:$0xff]   ;;  %v2437_v4 = vld [vmem:[%s3007_s0 + $0x8] sm:$0xff]   ;;  %vm309_vm3 = vcmask 261120   ;;  %vm190_vm4 = vcmask 1043456   ;;  %vm999_vm5 = vcmask 523264  }
   0x2   :  { %2181 = vmatprep.subr.bf16.mxu0 %v2434_v1  ;;  %v2436_v3 = vld [vmem:[%s3007_s0] sm:$0xff]   ;;  %2196 = vmatpush3.bf16.msra.mxu1 %v2435_v2  ;;  %v2438_v5 = vld [vmem:[%s3006_s2 + $0x38] sm:$0xff]   ;;  %v2440_v6 = vld [vmem:[%s3007_s0 + $0x10] sm:$0xff]   ;;  %vm1881_vm6 = vcmask 64512  }
   0x3   :  { %2182 = vmatpush3.bf16.msra.mxu0 %v2434_v1  ;;  %2183 = vmatprep.mubr.msk.bf16.mxu0 %vm80_vm1, %v2436_v3  ;;  %v2439_v7 = vld [vmem:[%s3006_s2 + $0x40] sm:$0xff]   ;;  %v2442_v8 = vld [vmem:[%s3007_s0 + $0x18] sm:$0xff]   ;;  %v2441_v9 = vld [vmem:[%s3006_s2 + $0x48] sm:$0xff]  }
   0x4   :  { %2197 = vmatprep.subr.bf16.mxu1 %v2517_v0  ;;  %2211 = vmatprep.subr.bf16.mxu0 %v2517_v0  ;;  %v2445_v10 = vld [vmem:[%s3007_s0 + $0x20] sm:$0xff]   ;;  %v2443_v11 = vld [vmem:[%s3006_s2 + $0x50] sm:$0xff]   ;;  %v2446_v12 = vld [vmem:[%s3007_s0 + $0x28] sm:$0xff]  }
   0x5   :  { %v2444_v13 = vld [vmem:[%s3006_s2 + $0x58] sm:$0xff]   ;;  %v192_v14 = vld [vmem:[%s3008_s1] sm:$0xf]  ;;  %v2448_v16 = vld [vmem:[%s3006_s2 + $0xc8] sm:$0xff]  }
   0x6   :  { %2184 = vmatmul.mubr.msk.bf16.vlgmr.msra.gmra.mrb[0].mxu0 %vm80_vm1, %v2437_v4  ;;  %2198 = vmatpush3.bf16.msra.mxu1 %v2438_v5  ;;  %v2447_v15 = vld [vmem:[%s3006_s2 + $0xc0] sm:$0xff]   ;;  %v2449_v17 = vld [vmem:[%s3006_s2 + $0x90] sm:$0xff]   ;;  %v2450_v18 = vld [vmem:[%s3006_s2 + $0x98] sm:$0xff]  }
   0x7   :  { %2199 = vmatprep.subr.bf16.mxu1 %v2517_v0  ;;  %2187 = vmatprep.mubr.msk.bf16.mxu0 %vm80_vm1, %v2440_v6  ;;  %v2451_v19 = vld [vmem:[%s3006_s2 + $0xf0] sm:$0xff]   ;;  %v1887_v21 = vld [vmem:[%s3009_s3] ss:$0 sm:$0xff]  ;;  %v186_v38 = vld [vmem:[%s3009_s3 + $0x2] sm:$0xf] }
   0x8   :  { %2212 = vmatpush3.bf16.msra.mxu0 %v2449_v17  ;;  %v188_v42 = vrot.slane %v186_v38, 4  ;;  %v2452_v59 = vld [vmem:[%s3006_s2 + $0xf8] sm:$0xff]   ;;  %v2679_v61 = vld [vmem:[%s3010_s4] sm:$0xff]  ;;  %v2684_v62 = vld [vmem:[%s3010_s4 + $0x10] sm:$0xff] }
   0x9   :  { %2213 = vmatprep.subr.bf16.mxu0 %v2517_v0  ;;  %674 = vrot.lane.b32.xlu1 %v2684_v62, %s2519_s14  ;;  %v2691_v63 = vld [vmem:[%s3010_s4 + $0x8] sm:$0xff]  ;;  %v2696_v1 = vld [vmem:[%s3010_s4 + $0x18] sm:$0xff]  ;;  %v1932_v3 = vld [vmem:[%s3009_s3 + $0x7] ss:$0 sm:$0xff] }
   0xa   :  { %2200 = vmatpush3.bf16.msra.mxu1 %v2439_v7  ;;  %v191_v46 = vsel %vm190_vm4, %v186_v38, %v188_v42  ;;  %670 = vrot.lane.b32.xlu0 %v2679_v61, %s2519_s14 }
   0xb   :  { %2201 = vmatprep.subr.bf16.mxu1 %v2517_v0 }
   0xc   :  { %2214 = vmatpush3.bf16.msra.mxu0 %v2450_v18 }
   0xd   :  { %2235 = vmatprep.subr.bf16.mxu0 %v2451_v19  ;;  %676 = vrot.lane.b32.xlu1 %v2696_v1, %s2519_s14 }
   0xe   :  { %2188 = vmatmul.mubr.msk.bf16.gmra.mrb[4].mxu0 %vm80_vm1, %v2442_v8  ;;  %2202 = vmatpush3.bf16.msra.mxu1 %v2441_v9 }
   0xf   :  { %2191 = vmatprep.mubr.msk.bf16.mxu0 %vm80_vm1, %v2445_v10  ;;  %2203 = vmatprep.subr.bf16.mxu1 %v2517_v0 }
  0x10   :  { %672 = vrot.lane.b32.xlu0 %v2691_v63, %s2519_s14 }
  0x12   :  { %2204 = vmatpush3.bf16.msra.mxu1 %v2443_v11 }
  0x13   :  { %2205 = vmatprep.subr.bf16.mxu1 %v2517_v0 }
  0x16   :  { %2192 = vmatmul.mubr.msk.bf16.gmra.mrb[8].mxu0 %vm80_vm1, %v2446_v12  ;;  %2206 = vmatpush3.bf16.msra.mxu1 %v2444_v13 }
  0x17   :  { %2215 = vmatprep.mubr.msk.bf16.mxu0 %vm2518_vm0, %v2517_v0  ;;  %2219 = vmatprep.subr.bf16.mxu1 %v2447_v15 }
  0x19   :  { %2208 = vmatmul.mubr.msk.bf16.vlgmr.msra.gmra.mrb[0].mxu1 %vm242_vm2, %v192_v14 }
  0x1a   :  { %2220 = vmatpush3.bf16.msra.mxu1 %v2447_v15 }
  0x1b   :  { %2221 = vmatprep.subr.bf16.mxu1 %v2448_v16 }
  0x1e   :  { %2222 = vmatpush3.bf16.msra.mxu1 %v2448_v16 }
  0xd9   :  { %v2185_v20 = vpop.f32.mrb[0].mxu0 }
  0xda   :  { %v133_v22 = vpop.f32.mrb[1].mxu0  ;;  %v142_v24 = vadd.f32 %v2185_v20, %v1887_v21 }
  0xdb   :  { %v2186_v23 = vpop.f32.mrb[2].mxu0  ;;  %v134_v27 = vadd.f32 %v1887_v21, %v133_v22 }
  0xdc   :  { %v145_v25 = vadd.f32 %v2186_v23, %v1887_v21  ;;  %v136_v26 = vpop.f32.mrb[3].mxu0 }
  0xdd   :  { %v137_v28 = vadd.f32 %v1887_v21, %v136_v26 }
  0xde   :  { %v2629_v29 = vpack.c.bf16 %v145_v25, %v142_v24  ;;  %v1924_v24 = vld [vmem:[%s3009_s3 + $0x6] ss:$0 sm:$0xff] }
  0xdf   :  { %v2631_v30 = vpack.c.bf16 %v137_v28, %v134_v27 }
  0xe1   :  { %2223 = vmatprep.mubr.msk.bf16.mxu1 %vm309_vm3, %v2631_v30  ;;  %v2189_v31 = vpop.f32.mrb[4].mxu0 }
  0xe2   :  { %v158_v32 = vadd.f32 %v2189_v31, %v1887_v21  ;;  %2224 = vmatmul.mubr.msk.bf16.vlgmr.msra.gmra.mrb[4].mxu1 %vm309_vm3, %v2629_v29  ;;  %v149_v33 = vpop.f32.mrb[5].mxu0 }
  0xe3   :  { %v150_v34 = vadd.f32 %v1887_v21, %v149_v33  ;;  %v2190_v35 = vpop.f32.mrb[6].mxu0 }
  0xe4   :  { %v161_v36 = vadd.f32 %v2190_v35, %v1887_v21  ;;  %v152_v37 = vpop.f32.mrb[7].mxu0 }
  0xe5   :  { %v153_v39 = vadd.f32 %v1887_v21, %v152_v37 }
  0xe6   :  { %v2640_v40 = vpack.c.bf16 %v161_v36, %v158_v32 }
  0xe7   :  { %v2642_v41 = vpack.c.bf16 %v153_v39, %v150_v34 }
  0xe9   :  { %2227 = vmatprep.mubr.msk.bf16.mxu1 %vm309_vm3, %v2642_v41  ;;  %v2193_v43 = vpop.f32.mrb[8].mxu0 }
  0xea   :  { %2228 = vmatmul.mubr.msk.bf16.gmra.mrb[8].mxu1 %vm309_vm3, %v2640_v40  ;;  %v174_v44 = vadd.f32 %v2193_v43, %v1887_v21  ;;  %v165_v45 = vpop.f32.mrb[9].mxu0 }
  0xeb   :  { %v166_v47 = vadd.f32 %v1887_v21, %v165_v45  ;;  %v2194_v48 = vpop.f32.mrb[10].mxu0 }
  0xec   :  { %v177_v49 = vadd.f32 %v2194_v48, %v1887_v21  ;;  %v168_v50 = vpop.f32.mrb[11].mxu0  ;;  %v280_v51 = vpop.f32.mrb[0].mxu1 }
  0xed   :  { %v169_v52 = vadd.f32 %v1887_v21, %v168_v50  ;;  %v2648_v53 = vadd.f32 %v280_v51, %v191_v46  ;;  %v2209_v55 = vpop.f32.mrb[1].mxu1 }
  0xee   :  { %v2650_v54 = vpack.c.bf16 %v177_v49, %v174_v44  ;;  %v283_v57 = vpop.f32.mrb[2].mxu1  ;;  %v1945_v49 = vld [vmem:[%s3009_s3 + $0x8] ss:$0 sm:$0xff] }
  0xef   :  { %v2652_v56 = vpack.c.bf16 %v169_v52, %v166_v47  ;;  %v291_v58 = vpack.c.bf16 %v2648_v53, %v2648_v53  ;;  %v2210_v60 = vpop.f32.mrb[3].mxu1 }
  0xf1   :  { %2231 = vmatprep.mubr.msk.bf16.mxu1 %vm309_vm3, %v2652_v56  ;;  %2216 = vmatmul.mubr.msk.bf16.vlgmr.msra.gmra.mrb[12].mxu0 %vm309_vm3, %v291_v58 }
  0xf2   :  { %2232 = vmatmul.mubr.msk.bf16.gmra.mrb[12].mxu1 %vm309_vm3, %v2650_v54  ;;  %2236 = vmatpush3.bf16.msra.mxu0 %v2451_v19 }
  0xf3   :  { %2239 = vmatprep.mubr.msk.bf16.mxu0 %vm309_vm3, %v2631_v30  ;;  %2237 = vmatprep.subr.bf16.mxu0 %v2452_v59 }
  0xf6   :  { %2238 = vmatpush3.bf16.msra.mxu0 %v2452_v59 }
  0xf9   :  { %2240 = vmatmul.mubr.msk.bf16.vlgmr.msra.gmra.mrb[16].mxu0 %vm309_vm3, %v2629_v29 }
  0xfa   :  { %2243 = vmatprep.mubr.msk.bf16.mxu0 %vm309_vm3, %v2642_v41 }
 0x101   :  { %2244 = vmatmul.mubr.msk.bf16.gmra.mrb[20].mxu0 %vm309_vm3, %v2640_v40 }
 0x102   :  { %2247 = vmatprep.mubr.msk.bf16.mxu0 %vm309_vm3, %v2652_v56 }
 0x109   :  { %2248 = vmatmul.mubr.msk.bf16.gmra.mrb[24].mxu0 %vm309_vm3, %v2650_v54 }
 0x1b5   :  { %v2225_v2 = vpop.f32.mrb[4].mxu1 }
 0x1b6   :  { %v427_v4 = vpop.f32.mrb[5].mxu1  ;;  %v436_v6 = vadd.f32 %v2225_v2, %v1932_v3 }
 0x1b7   :  { %v2226_v5 = vpop.f32.mrb[6].mxu1  ;;  %v428_v9 = vadd.f32 %v1932_v3, %v427_v4 }
 0x1b8   :  { %v439_v7 = vadd.f32 %v2226_v5, %v1932_v3  ;;  %v430_v8 = vpop.f32.mrb[7].mxu1 }
 0x1b9   :  { %v431_v10 = vadd.f32 %v1932_v3, %v430_v8 }
 0x1ba   :  { %v584_v11 = vpack.c.bf16 %v439_v7, %v436_v6 }
 0x1bb   :  { %v583_v12 = vpack.c.bf16 %v431_v10, %v428_v9 }
 0x1bc   :  { %v599_v25 = vsel %vm309_vm3, %v584_v11, 0 }
 0x1bd   :  { %2419 = vmatprep.subr.msk.bf16.mxu1 %vm309_vm3, %v583_v12  ;;  %v2229_v13 = vpop.f32.mrb[8].mxu1  ;;  %v596_v14 = vsel %vm309_vm3, %v583_v12, 0 }
 0x1be   :  { %v452_v15 = vadd.f32 %v2229_v13, %v1932_v3  ;;  %2252 = vmatpush3.bf16.xpose.msra.mxu1 %v596_v14  ;;  %v443_v16 = vpop.f32.mrb[9].mxu1 }
 0x1bf   :  { %v444_v17 = vadd.f32 %v1932_v3, %v443_v16  ;;  %2420 = vmatprep.subr.msk.bf16.mxu1 %vm309_vm3, %v584_v11  ;;  %v2230_v18 = vpop.f32.mrb[10].mxu1 }
 0x1c0   :  { %v455_v19 = vadd.f32 %v2230_v18, %v1932_v3  ;;  %v446_v20 = vpop.f32.mrb[11].mxu1 }
 0x1c1   :  { %v447_v21 = vadd.f32 %v1932_v3, %v446_v20 }
 0x1c2   :  { %v586_v22 = vpack.c.bf16 %v455_v19, %v452_v15 }
 0x1c3   :  { %v585_v23 = vpack.c.bf16 %v447_v21, %v444_v17 }
 0x1c4   :  { %v347_v26 = vpop.f32.mrb[12].mxu0  ;;  %v605_v5 = vsel %vm309_vm3, %v586_v22, 0 }
 0x1c5   :  { %v2233_v27 = vpop.f32.mrb[12].mxu1  ;;  %v2710_v28 = vadd.f32 %v1924_v24, %v347_v26  ;;  %v2217_v31 = vpop.f32.mrb[13].mxu0  ;;  %v602_v50 = vsel %vm309_vm3, %v585_v23, 0 }
 0x1c6   :  { %2254 = vmatpush3.bf16.xpose.msra.mxu1 %v599_v25  ;;  %v459_v32 = vpop.f32.mrb[13].mxu1  ;;  %v350_v33 = vpop.f32.mrb[14].mxu0  ;;  %v468_v34 = vadd.f32 %v2233_v27, %v1932_v3 }
 0x1c7   :  { %2421 = vmatprep.subr.msk.bf16.mxu1 %vm309_vm3, %v585_v23  ;;  %v460_v35 = vadd.f32 %v1932_v3, %v459_v32  ;;  %v2234_v36 = vpop.f32.mrb[14].mxu1  ;;  %v577_v37 = vmul.f32 %v2710_v28, %v2679_v61  ;;  %v578_v38 = vmul.f32 %v2710_v28, %v2691_v63  ;;  %v2218_v39 = vpop.f32.mrb[15].mxu0  ;;  %v579_v26 = vmul.f32 %v2710_v28, %v2684_v62 }
 0x1c8   :  { %v462_v42 = vpop.f32.mrb[15].mxu1  ;;  %v471_v43 = vadd.f32 %v2234_v36, %v1932_v3  ;;  %v580_v27 = vmul.f32 %v2710_v28, %v2696_v1  ;;  %v2737_v33 = vpop.permute.xlu0 %670 }
 0x1c9   :  { %v463_v44 = vadd.f32 %v1932_v3, %v462_v42  ;;  %v581_v45 = vpack.c.bf16 %v578_v38, %v577_v37 }
 0x1ca   :  { %v588_v46 = vpack.c.bf16 %v471_v43, %v468_v34  ;;  %v582_v32 = vpack.c.bf16 %v580_v27, %v579_v26  ;;  %v2739_v34 = vpop.permute.xlu1 %674 }
 0x1cb   :  { %v587_v47 = vpack.c.bf16 %v463_v44, %v460_v35  ;;  %2263 = vmatprep.mubr.msk.bf16.mxu1 %vm309_vm3, %v581_v45 }
 0x1cc   :  { %v2241_v48 = vpop.f32.mrb[16].mxu0  ;;  %v611_v31 = vsel %vm309_vm3, %v588_v46, 0  ;;  %v2741_v42 = vpop.permute.xlu0 %672 }
 0x1cd   :  { %v530_v51 = vpop.f32.mrb[17].mxu0  ;;  %v539_v55 = vadd.f32 %v2241_v48, %v1945_v49  ;;  %v608_v16 = vsel %vm309_vm3, %v587_v47, 0 }
 0x1ce   :  { %2256 = vmatpush3.bf16.xpose.msra.mxu1 %v602_v50  ;;  %v2242_v52 = vpop.f32.mrb[18].mxu0  ;;  %v531_v59 = vadd.f32 %v1945_v49, %v530_v51 }
 0x1cf   :  { %2422 = vmatprep.subr.msk.bf16.mxu1 %vm309_vm3, %v586_v22  ;;  %v542_v57 = vadd.f32 %v2242_v52, %v1945_v49  ;;  %v533_v58 = vpop.f32.mrb[19].mxu0 }
 0x1d0   :  { %v534_v60 = vadd.f32 %v1945_v49, %v533_v58 }
 0x1d1   :  { %v733_v2 = vpack.c.bf16 %v542_v57, %v539_v55 }
 0x1d2   :  { %v732_v3 = vpack.c.bf16 %v534_v60, %v531_v59 }
 0x1d4   :  { %v2245_v4 = vpop.f32.mrb[20].mxu0  ;;  %2267 = vmatprep.subr.bf16.mxu0 %v732_v3 }
 0x1d5   :  { %v546_v6 = vpop.f32.mrb[21].mxu0  ;;  %2268 = vmatpush3.bf16.msra.mxu0 %v732_v3  ;;  %v555_v8 = vadd.f32 %v2245_v4, %v1945_v49 }
 0x1d6   :  { %2258 = vmatpush3.bf16.xpose.msra.mxu1 %v605_v5  ;;  %v2246_v7 = vpop.f32.mrb[22].mxu0  ;;  %2269 = vmatprep.subr.bf16.mxu0 %v733_v2  ;;  %v547_v11 = vadd.f32 %v1945_v49, %v546_v6 }
 0x1d7   :  { %2423 = vmatprep.subr.msk.bf16.mxu1 %vm309_vm3, %v587_v47  ;;  %v558_v9 = vadd.f32 %v2246_v7, %v1945_v49  ;;  %v549_v10 = vpop.f32.mrb[23].mxu0 }
 0x1d8   :  { %v550_v12 = vadd.f32 %v1945_v49, %v549_v10 }
 0x1d9   :  { %v735_v13 = vpack.c.bf16 %v558_v9, %v555_v8  ;;  %2270 = vmatpush3.bf16.msra.mxu0 %v733_v2 }
 0x1da   :  { %v734_v14 = vpack.c.bf16 %v550_v12, %v547_v11 }
 0x1dc   :  { %v2249_v15 = vpop.f32.mrb[24].mxu0  ;;  %2271 = vmatprep.subr.bf16.mxu0 %v734_v14 }
 0x1dd   :  { %v562_v17 = vpop.f32.mrb[25].mxu0  ;;  %2272 = vmatpush3.bf16.msra.mxu0 %v734_v14  ;;  %v571_v19 = vadd.f32 %v2249_v15, %v1945_v49 }
 0x1de   :  { %2260 = vmatpush3.bf16.xpose.msra.mxu1 %v608_v16  ;;  %v2250_v18 = vpop.f32.mrb[26].mxu0  ;;  %2273 = vmatprep.subr.bf16.mxu0 %v735_v13  ;;  %v563_v22 = vadd.f32 %v1945_v49, %v562_v17 }
 0x1df   :  { %2424 = vmatprep.subr.msk.bf16.mxu1 %vm309_vm3, %v588_v46  ;;  %v574_v20 = vadd.f32 %v2250_v18, %v1945_v49  ;;  %v565_v21 = vpop.f32.mrb[27].mxu0 }
 0x1e0   :  { %v566_v23 = vadd.f32 %v1945_v49, %v565_v21  ;;  %v2747_v49 = vpop.permute.xlu1 %676 }
 0x1e1   :  { %v737_v24 = vpack.c.bf16 %v574_v20, %v571_v19  ;;  %2274 = vmatpush3.bf16.msra.mxu0 %v735_v13 }
 0x1e2   :  { %v736_v25 = vpack.c.bf16 %v566_v23, %v563_v22 }
 0x1e4   :  { %2275 = vmatprep.subr.bf16.mxu0 %v736_v25 }
 0x1e5   :  { %2276 = vmatpush3.bf16.msra.mxu0 %v736_v25 }
 0x1e6   :  { %2262 = vmatpush3.bf16.xpose.msra.mxu1 %v611_v31  ;;  %2277 = vmatprep.subr.bf16.mxu0 %v737_v24 }
 0x1e7   :  { %2311 = vmatprep.subr.bf16.mxu1 %v2517_v0 }
 0x1e9   :  { %2278 = vmatpush3.bf16.msra.mxu0 %v737_v24 }
 0x1ea   :  { %2283 = vmatprep.subr.bf16.mxu0 %v2517_v0 }
 0x1ed   :  { %2264 = vmatmul.mubr.msk.bf16.vlgmr.msra.gmra.mrb[16].mxu1 %vm309_vm3, %v582_v32 }
 0x1ee   :  { %2315 = vmatprep.mubr.msk.bf16.mxu1 %vm2518_vm0, %v2517_v0 }
 0x2c0   :  { %v2265_v28 = vpop.f32.mrb[16].mxu1 }
 0x2c1   :  { %v647_v35 = vpop.f32.mrb[17].mxu1  ;;  %v664_v36 = vmul.f32 0.35355338, %v2265_v28 }
 0x2c2   :  { %v662_v37 = vmul.f32 0.35355338, %v647_v35  ;;  %v2266_v38 = vpop.f32.mrb[18].mxu1 }
 0x2c3   :  { %v650_v39 = vpop.f32.mrb[19].mxu1  ;;  %v665_v45 = vmul.f32 0.35355338, %v2266_v38  ;;  %v684_v48 = vadd.f32 %v2739_v34, %v664_v36  ;;  %v2453_v36 = vld [vmem:[%s3006_s2 + $0x120] sm:$0xff]  }
 0x2c4   :  { %v663_v43 = vmul.f32 0.35355338, %v650_v39  ;;  %v682_v44 = vadd.f32 %v2737_v33, %v662_v37  ;;  %v2454_v37 = vld [vmem:[%s3006_s2 + $0x128] sm:$0xff]  }
 0x2c5   :  { %v685_v51 = vadd.f32 %v2747_v49, %v665_v45  ;;  %v692_v52 = vsel %vm242_vm2, %v684_v48, -inf }
 0x2c6   :  { %v683_v46 = vadd.f32 %v2741_v42, %v663_v43  ;;  %v686_v47 = vsel %vm242_vm2, %v682_v44, -inf }
 0x2c7   :  { %687 = vmax.xlane.f32.xlu0 %v686_v47  ;;  %v695_v55 = vsel %vm242_vm2, %v685_v51, -inf }
 0x2c8   :  { %v689_v50 = vsel %vm242_vm2, %v683_v46, -inf }
 0x2c9   :  { %690 = vmax.xlane.f32.xlu1 %v689_v50 }
 0x2cb   :  { %693 = vmax.xlane.f32.xlu0 %v692_v52 }
 0x2cf   :  { %696 = vmax.xlane.f32.xlu0 %v695_v55 }
 0x354   :  { %v688_v57 = vpop.xlane.xlu0 %687 }
 0x355   :  { %v698_v58 = vsub.f32 %v682_v44, %v688_v57  ;;  %v1962_v57 = vld [vmem:[%s3009_s3 + $0x9] ss:$0 sm:$0xff] }
 0x356   :  { %v691_v59 = vpop.xlane.xlu1 %690 }
 0x357   :  { %v702_v60 = vmul.f32 1.442695, %v698_v58  ;;  %v699_v2 = vsub.f32 %v683_v46, %v691_v59 }
 0x358   :  { %v694_v3 = vpop.xlane.xlu0 %693 }
 0x359   :  { %2477 = vpow2.f32 %v702_v60  ;;  %v704_v4 = vmul.f32 1.442695, %v699_v2  ;;  %v700_v5 = vsub.f32 %v684_v48, %v694_v3 }
 0x35b   :  { %2479 = vpow2.f32 %v704_v4  ;;  %v706_v6 = vmul.f32 1.442695, %v700_v5 }
 0x35c   :  { %v697_v7 = vpop.xlane.xlu0 %696 }
 0x35d   :  { %2481 = vpow2.f32 %v706_v6  ;;  %v701_v8 = vsub.f32 %v685_v51, %v697_v7 }
 0x35f   :  { %v708_v9 = vmul.f32 1.442695, %v701_v8 }
 0x361   :  { %2483 = vpow2.f32 %v708_v9 }
 0x363   :  { %v2478_v10 = vpop.eup %2477 }
 0x364   :  { %v710_v11 = vsel %vm242_vm2, %v2478_v10, 0.0 }
 0x365   :  { %v2480_v12 = vpop.eup %2479  ;;  %711 = vadd.xlane.f32.xlu1 %v710_v11  ;;  %v2455_v11 = vld [vmem:[%s3006_s2 + $0x150] sm:$0xff]  }
 0x366   :  { %v713_v13 = vsel %vm242_vm2, %v2480_v12, 0.0 }
 0x367   :  { %v2482_v14 = vpop.eup %2481  ;;  %714 = vadd.xlane.f32.xlu0 %v713_v13 }
 0x368   :  { %v716_v15 = vsel %vm242_vm2, %v2482_v14, 0.0 }
 0x369   :  { %717 = vadd.xlane.f32.xlu1 %v716_v15 }
 0x36b   :  { %v2484_v16 = vpop.eup %2483 }
 0x36c   :  { %v719_v17 = vsel %vm242_vm2, %v2484_v16, 0.0 }
 0x36d   :  { %720 = vadd.xlane.f32.xlu0 %v719_v17 }
 0x3f2   :  { %v712_v18 = vpop.xlane.xlu1 %711 }
 0x3f3   :  { %2485 = vrcp.f32 %v712_v18  ;;  %v1967_v18 = vld [vmem:[%s3009_s3 + $0xd] ss:$0 sm:$0xff] }
 0x3f4   :  { %v715_v19 = vpop.xlane.xlu0 %714 }
 0x3f5   :  { %2487 = vrcp.f32 %v715_v19 }
 0x3f6   :  { %v718_v20 = vpop.xlane.xlu1 %717 }
 0x3f7   :  { %2489 = vrcp.f32 %v718_v20 }
 0x3fa   :  { %v721_v21 = vpop.xlane.xlu0 %720 }
 0x3fb   :  { %2491 = vrcp.f32 %v721_v21  ;;  %v2457_v21 = vld [vmem:[%s3006_s2 + $0x180] sm:$0xff]  }
 0x3fd   :  { %v2486_v22 = vpop.eup %2485 }
 0x3fe   :  { %v726_v24 = vmul.f32 %v2486_v22, %v2478_v10 }
 0x3ff   :  { %v2488_v23 = vpop.eup %2487 }
 0x400   :  { %v727_v25 = vmul.f32 %v2488_v23, %v2480_v12  ;;  %v2456_v12 = vld [vmem:[%s3006_s2 + $0x158] sm:$0xff]   ;;  %v2458_v23 = vld [vmem:[%s3006_s2 + $0x188] sm:$0xff]  }
 0x401   :  { %v2490_v27 = vpop.eup %2489 }
 0x402   :  { %v730_v26 = vpack.c.bf16 %v727_v25, %v726_v24  ;;  %v728_v32 = vmul.f32 %v2490_v27, %v2482_v14  ;;  %v2459_v24 = vld [vmem:[%s3006_s2 + $0x190] sm:$0xff]   ;;  %v2460_v25 = vld [vmem:[%s3006_s2 + $0x198] sm:$0xff]   ;;  %v1972_v27 = vld [vmem:[%s3009_s3 + $0xa] ss:$0 sm:$0xff] }
 0x404   :  { %2279 = vmatprep.mubr.msk.bf16.mxu0 %vm242_vm2, %v730_v26  ;;  %v2461_v26 = vld [vmem:[%s3006_s2 + $0x210] sm:$0xff]  }
 0x405   :  { %v2492_v31 = vpop.eup %2491 }
 0x406   :  { %v729_v28 = vmul.f32 %v2492_v31, %v2484_v16  ;;  %v1966_v16 = vld [vmem:[%s3009_s3 + $0xc] ss:$0 sm:$0xff] }
 0x408   :  { %v731_v35 = vpack.c.bf16 %v729_v28, %v728_v32 }
 0x40a   :  { %2280 = vmatmul.mubr.msk.bf16.vlgmr.msra.gmra.mrb[28].mxu0 %vm242_vm2, %v731_v35 }
 0x40b   :  { %2287 = vmatprep.mubr.msk.bf16.mxu0 %vm2518_vm0, %v2517_v0  ;;  %2284 = vmatpush3.bf16.msra.mxu0 %v2453_v36 }
 0x40c   :  { %2285 = vmatprep.subr.bf16.mxu0 %v2517_v0 }
 0x40f   :  { %2286 = vmatpush3.bf16.msra.mxu0 %v2454_v37 }
 0x410   :  { %2291 = vmatprep.subr.bf16.mxu0 %v2517_v0 }
 0x4dd   :  { %v2281_v38 = vpop.f32.mrb[28].mxu0 }
 0x4de   :  { %v778_v39 = vpop.f32.mrb[29].mxu0  ;;  %v795_v47 = vmul.f32 %v2281_v38, %v2684_v62 }
 0x4df   :  { %v2282_v43 = vpop.f32.mrb[30].mxu0  ;;  %v793_v45 = vmul.f32 %v778_v39, %v2679_v61  ;;  %v2462_v39 = vld [vmem:[%s3006_s2 + $0x218] sm:$0xff]  }
 0x4e0   :  { %v781_v44 = vpop.f32.mrb[31].mxu0  ;;  %v796_v50 = vmul.f32 %v2282_v43, %v2696_v1  ;;  %v1984_v43 = vld [vmem:[%s3009_s3 + $0xb] ss:$0 sm:$0xff] }
 0x4e1   :  { %v794_v46 = vmul.f32 %v781_v44, %v2691_v63 }
 0x4e3   :  { %v797_v48 = vadd.f32 %v794_v46, %v793_v45 }
 0x4e5   :  { %v798_v51 = vadd.f32 %v797_v48, %v795_v47 }
 0x4e7   :  { %v799_v52 = vadd.f32 %v798_v51, %v796_v50 }
 0x4e9   :  { %v805_v55 = vpack.c.bf16 %v799_v52, %v799_v52 }
 0x4eb   :  { %2288 = vmatmul.mubr.msk.bf16.vlgmr.msra.gmra.mrb[32].mxu0 %vm309_vm3, %v805_v55  ;;  %v2017_v55 = vld [vmem:[%s3009_s3 + $0x12] ss:$0 sm:$0xff] }
 0x4ec   :  { %2295 = vmatprep.mubr.msk.bf16.mxu0 %vm2518_vm0, %v2517_v0  ;;  %2292 = vmatpush3.bf16.msra.mxu0 %v2455_v11 }
 0x4ed   :  { %2293 = vmatprep.subr.bf16.mxu0 %v2517_v0 }
 0x4f0   :  { %2294 = vmatpush3.bf16.msra.mxu0 %v2456_v12 }
 0x4f1   :  { %2299 = vmatprep.subr.bf16.mxu0 %v2517_v0 }
 0x5be   :  { %v860_v58 = vpop.f32.mrb[32].mxu0 }
 0x5bf   :  { %v861_v59 = vadd.f32 %v1962_v57, %v860_v58  ;;  %v2289_v60 = vpop.f32.mrb[33].mxu0 }
 0x5c0   :  { %v863_v2 = vpop.f32.mrb[34].mxu0 }
 0x5c1   :  { %v2290_v3 = vpop.f32.mrb[35].mxu0  ;;  %v866_v4 = vadd.f32 %v861_v59, %v2648_v53 }
 0x5c3   :  { %v869_v5 = vsel %vm309_vm3, %v866_v4, 0.0 }
 0x5c4   :  { %870 = vadd.xlane.f32.xlu1 %v869_v5 }
 0x651   :  { %v871_v6 = vpop.xlane.xlu1 %870 }
 0x652   :  { %v873_v7 = vmul.f32 0.03125, %v871_v6 }
 0x654   :  { %v874_v8 = vsub.f32 %v866_v4, %v873_v7 }
 0x656   :  { %v875_v9 = vmul.f32 %v874_v8, %v874_v8 }
 0x658   :  { %v876_v10 = vsel %vm309_vm3, %v875_v9, 0.0 }
 0x659   :  { %877 = vadd.xlane.f32.xlu0 %v876_v10 }
 0x6e6   :  { %v878_v53 = vpop.xlane.xlu0 %877 }
 0x6e7   :  { %v879_v13 = vmul.f32 0.03125, %v878_v53 }
 0x6e9   :  { %v880_v14 = vadd.f32 1e-05, %v879_v13 }
 0x6eb   :  { %2493 = vrsqrt.f32 %v880_v14 }
 0x6f5   :  { %v2494_v15 = vpop.eup %2493 }
 0x6f6   :  { %v882_v17 = vmul.f32 %v2494_v15, %v874_v8 }
 0x6f8   :  { %v887_v19 = vmul.f32 %v1966_v16, %v882_v17 }
 0x6fa   :  { %v892_v20 = vadd.f32 %v1967_v18, %v887_v19 }
 0x6fc   :  { %v898_v22 = vpack.c.bf16 %v892_v20, %v892_v20 }
 0x6fe   :  { %2296 = vmatmul.mubr.msk.bf16.vlgmr.msra.gmra.mrb[36].mxu0 %vm309_vm3, %v898_v22 }
 0x6ff   :  { %2300 = vmatpush3.bf16.msra.mxu0 %v2457_v21  ;;  %2307 = vmatprep.mubr.msk.bf16.mxu0 %vm2518_vm0, %v2517_v0 }
 0x700   :  { %2301 = vmatprep.subr.bf16.mxu0 %v2517_v0 }
 0x703   :  { %2302 = vmatpush3.bf16.msra.mxu0 %v2458_v23 }
 0x704   :  { %2303 = vmatprep.subr.bf16.mxu0 %v2517_v0 }
 0x707   :  { %2304 = vmatpush3.bf16.msra.mxu0 %v2459_v24 }
 0x708   :  { %2305 = vmatprep.subr.bf16.mxu0 %v2517_v0 }
 0x70b   :  { %2306 = vmatpush3.bf16.msra.mxu0 %v2460_v25 }
 0x70c   :  { %2335 = vmatprep.subr.bf16.mxu0 %v2461_v26 }
 0x7d1   :  { %v953_v31 = vpop.f32.mrb[36].mxu0 }
 0x7d2   :  { %v954_v32 = vadd.f32 %v1972_v27, %v953_v31  ;;  %v2297_v28 = vpop.f32.mrb[37].mxu0 }
 0x7d3   :  { %v956_v35 = vpop.f32.mrb[38].mxu0 }
 0x7d4   :  { %v959_v36 = vmax.f32 %v954_v32, 0.0  ;;  %v2298_v37 = vpop.f32.mrb[39].mxu0  ;;  %v2463_v35 = vld [vmem:[%s3006_s2 + $0x1b0] sm:$0xff]  }
 0x7d5   :  { %2312 = vmatpush3.bf16.msra.mxu1 %v2463_v35  ;;  %v2465_v37 = vld [vmem:[%s3006_s2 + $0x1e0] sm:$0xff]  }
 0x7d6   :  { %v969_v38 = vpack.c.bf16 %v959_v36, %v959_v36  ;;  %v2464_v36 = vld [vmem:[%s3006_s2 + $0x1b8] sm:$0xff]   ;;  %2313 = vmatprep.subr.bf16.mxu1 %v2517_v0 }
 0x7d8   :  { %2308 = vmatmul.mubr.msk.bf16.vlgmr.msra.gmra.mrb[40].mxu0 %vm999_vm5, %v969_v38 }
 0x7d9   :  { %2336 = vmatpush3.bf16.msra.mxu0 %v2461_v26  ;;  %2339 = vmatprep.mubr.msk.bf16.mxu0 %vm309_vm3, %v2631_v30 }
 0x7da   :  { %2337 = vmatprep.subr.bf16.mxu0 %v2462_v39  ;;  %2314 = vmatpush3.bf16.msra.mxu1 %v2464_v36 }
 0x7db   :  { %2319 = vmatprep.subr.bf16.mxu1 %v2465_v37 }
 0x7dd   :  { %2338 = vmatpush3.bf16.msra.mxu0 %v2462_v39 }
 0x7e0   :  { %2340 = vmatmul.mubr.msk.bf16.vlgmr.msra.gmra.mrb[44].mxu0 %vm309_vm3, %v2629_v29 }
 0x7e1   :  { %2343 = vmatprep.mubr.msk.bf16.mxu0 %vm309_vm3, %v2642_v41 }
 0x7e8   :  { %2344 = vmatmul.mubr.msk.bf16.gmra.mrb[48].mxu0 %vm309_vm3, %v2640_v40 }
 0x7e9   :  { %2347 = vmatprep.mubr.msk.bf16.mxu0 %vm309_vm3, %v2652_v56 }
 0x7f0   :  { %2348 = vmatmul.mubr.msk.bf16.gmra.mrb[52].mxu0 %vm309_vm3, %v2650_v54 }
 0x8ab   :  { %v1037_v44 = vpop.f32.mrb[40].mxu0 }
 0x8ac   :  { %v1038_v45 = vadd.f32 %v1984_v43, %v1037_v44  ;;  %v2309_v46 = vpop.f32.mrb[41].mxu0 }
 0x8ad   :  { %v1040_v47 = vpop.f32.mrb[42].mxu0 }
 0x8ae   :  { %v2310_v48 = vpop.f32.mrb[43].mxu0  ;;  %v1043_v50 = vadd.f32 %v1038_v45, %v892_v20  ;;  %v1990_v45 = vld [vmem:[%s3009_s3 + $0xe] ss:$0 sm:$0xff]  ;;  %v1991_v47 = vld [vmem:[%s3009_s3 + $0xf] ss:$0 sm:$0xff] }
 0x8b0   :  { %v1046_v51 = vsel %vm309_vm3, %v1043_v50, 0.0 }
 0x8b1   :  { %1047 = vadd.xlane.f32.xlu1 %v1046_v51 }
 0x8b3   :  { %v2341_v52 = vpop.f32.mrb[44].mxu0 }
 0x8b4   :  { %v1294_v57 = vpop.f32.mrb[45].mxu0  ;;  %v1303_v59 = vadd.f32 %v2341_v52, %v2017_v55  ;;  %v2466_v52 = vld [vmem:[%s3006_s2 + $0x1e8] sm:$0xff]  }
 0x8b5   :  { %v2342_v58 = vpop.f32.mrb[46].mxu0  ;;  %v1295_v3 = vadd.f32 %v2017_v55, %v1294_v57 }
 0x8b6   :  { %v1306_v60 = vadd.f32 %v2342_v58, %v2017_v55  ;;  %v1297_v2 = vpop.f32.mrb[47].mxu0 }
 0x8b7   :  { %v1298_v4 = vadd.f32 %v2017_v55, %v1297_v2 }
 0x8b8   :  { %v1481_v5 = vpack.c.bf16 %v1306_v60, %v1303_v59 }
 0x8b9   :  { %v1480_v6 = vpack.c.bf16 %v1298_v4, %v1295_v3 }
 0x8bb   :  { %v2345_v7 = vpop.f32.mrb[48].mxu0  ;;  %2367 = vmatprep.subr.bf16.mxu0 %v1480_v6 }
 0x8bc   :  { %v1310_v8 = vpop.f32.mrb[49].mxu0  ;;  %2368 = vmatpush3.bf16.msra.mxu0 %v1480_v6  ;;  %v1319_v10 = vadd.f32 %v2345_v7, %v2017_v55 }
 0x8bd   :  { %v2346_v9 = vpop.f32.mrb[50].mxu0  ;;  %2369 = vmatprep.subr.bf16.mxu0 %v1481_v5  ;;  %v1311_v53 = vadd.f32 %v2017_v55, %v1310_v8 }
 0x8be   :  { %v1322_v11 = vadd.f32 %v2346_v9, %v2017_v55  ;;  %v1313_v12 = vpop.f32.mrb[51].mxu0 }
 0x8bf   :  { %v1314_v13 = vadd.f32 %v2017_v55, %v1313_v12 }
 0x8c0   :  { %v1483_v14 = vpack.c.bf16 %v1322_v11, %v1319_v10  ;;  %2370 = vmatpush3.bf16.msra.mxu0 %v1481_v5 }
 0x8c1   :  { %v1482_v15 = vpack.c.bf16 %v1314_v13, %v1311_v53 }
 0x8c3   :  { %v2349_v16 = vpop.f32.mrb[52].mxu0  ;;  %2371 = vmatprep.subr.bf16.mxu0 %v1482_v15 }
 0x8c4   :  { %v1326_v17 = vpop.f32.mrb[53].mxu0  ;;  %2372 = vmatpush3.bf16.msra.mxu0 %v1482_v15  ;;  %v1335_v19 = vadd.f32 %v2349_v16, %v2017_v55 }
 0x8c5   :  { %v2350_v18 = vpop.f32.mrb[54].mxu0  ;;  %2373 = vmatprep.subr.bf16.mxu0 %v1483_v14  ;;  %v1327_v22 = vadd.f32 %v2017_v55, %v1326_v17 }
 0x8c6   :  { %v1338_v20 = vadd.f32 %v2350_v18, %v2017_v55  ;;  %v1329_v21 = vpop.f32.mrb[55].mxu0 }
 0x8c7   :  { %v1330_v23 = vadd.f32 %v2017_v55, %v1329_v21 }
 0x8c8   :  { %v1485_v24 = vpack.c.bf16 %v1338_v20, %v1335_v19  ;;  %2374 = vmatpush3.bf16.msra.mxu0 %v1483_v14 }
 0x8c9   :  { %v1484_v25 = vpack.c.bf16 %v1330_v23, %v1327_v22 }
 0x8cb   :  { %2375 = vmatprep.subr.bf16.mxu0 %v1484_v25 }
 0x8cc   :  { %2376 = vmatpush3.bf16.msra.mxu0 %v1484_v25 }
 0x8cd   :  { %2377 = vmatprep.subr.bf16.mxu0 %v1485_v24 }
 0x8d0   :  { %2378 = vmatpush3.bf16.msra.mxu0 %v1485_v24 }
 0x8d1   :  { %2383 = vmatprep.subr.bf16.mxu0 %v2517_v0 }
 0x93e   :  { %v1048_v26 = vpop.xlane.xlu1 %1047 }
 0x93f   :  { %v1049_v27 = vmul.f32 0.03125, %v1048_v26 }
 0x941   :  { %v1050_v31 = vsub.f32 %v1043_v50, %v1049_v27 }
 0x943   :  { %v1051_v32 = vmul.f32 %v1050_v31, %v1050_v31 }
 0x945   :  { %v1052_v28 = vsel %vm309_vm3, %v1051_v32, 0.0 }
 0x946   :  { %1053 = vadd.xlane.f32.xlu0 %v1052_v28 }
 0x9d3   :  { %v1054_v38 = vpop.xlane.xlu0 %1053 }
 0x9d4   :  { %v1055_v39 = vmul.f32 0.03125, %v1054_v38 }
 0x9d6   :  { %v1056_v43 = vadd.f32 1e-05, %v1055_v39 }
 0x9d8   :  { %2495 = vrsqrt.f32 %v1056_v43 }
 0x9e2   :  { %v2496_v44 = vpop.eup %2495 }
 0x9e3   :  { %v1058_v46 = vmul.f32 %v2496_v44, %v1050_v31 }
 0x9e5   :  { %v1063_v48 = vmul.f32 %v1990_v45, %v1058_v46 }
 0x9e7   :  { %v2861_v50 = vadd.f32 %v1991_v47, %v1063_v48 }
 0x9e9   :  { %v1074_v51 = vpack.c.bf16 %v2861_v50, %v2861_v50 }
 0x9eb   :  { %2316 = vmatmul.mubr.msk.bf16.vlgmr.msra.gmra.mrb[20].mxu1 %vm309_vm3, %v1074_v51 }
 0x9ec   :  { %2320 = vmatpush3.bf16.msra.mxu1 %v2465_v37  ;;  %2323 = vmatprep.mubr.msk.bf16.mxu1 %vm309_vm3, %v2631_v30  ;;  %v1996_v30 = vld [vmem:[%s3009_s3 + $0x10] ss:$0 sm:$0xff] }
 0x9ed   :  { %2321 = vmatprep.subr.bf16.mxu1 %v2466_v52 }
 0x9f0   :  { %2322 = vmatpush3.bf16.msra.mxu1 %v2466_v52 }
 0x9f3   :  { %2324 = vmatmul.mubr.msk.bf16.vlgmr.msra.gmra.mrb[24].mxu1 %vm309_vm3, %v2629_v29 }
 0x9f4   :  { %2327 = vmatprep.mubr.msk.bf16.mxu1 %vm309_vm3, %v2642_v41 }
 0x9fb   :  { %2328 = vmatmul.mubr.msk.bf16.gmra.mrb[28].mxu1 %vm309_vm3, %v2640_v40 }
 0x9fc   :  { %2331 = vmatprep.mubr.msk.bf16.mxu1 %vm309_vm3, %v2652_v56 }
 0xa03   :  { %2332 = vmatmul.mubr.msk.bf16.gmra.mrb[32].mxu1 %vm309_vm3, %v2650_v54  ;;  %v2004_v54 = vld [vmem:[%s3009_s3 + $0x11] ss:$0 sm:$0xff] }
 0xabe   :  { %v1129_v55 = vpop.f32.mrb[20].mxu1 }
 0xabf   :  { %v1130_v57 = vadd.f32 %v1996_v30, %v1129_v55  ;;  %v2317_v58 = vpop.f32.mrb[21].mxu1 }
 0xac0   :  { %v1132_v29 = vpop.f32.mrb[22].mxu1 }
 0xac1   :  { %v1341_v59 = vmul.f32 %v1130_v57, %v2679_v61  ;;  %v1342_v41 = vmul.f32 %v1130_v57, %v2691_v63  ;;  %v2318_v60 = vpop.f32.mrb[23].mxu1  ;;  %v1343_v43 = vmul.f32 %v1130_v57, %v2684_v62  ;;  %v1344_v44 = vmul.f32 %v1130_v57, %v2696_v1 }
 0xac3   :  { %v1345_v40 = vpack.c.bf16 %v1342_v41, %v1341_v59  ;;  %v1346_v45 = vpack.c.bf16 %v1344_v44, %v1343_v43 }
 0xac5   :  { %2363 = vmatprep.mubr.msk.bf16.mxu1 %vm309_vm3, %v1345_v40 }
 0xac6   :  { %v2325_v56 = vpop.f32.mrb[24].mxu1 }
 0xac7   :  { %v1191_v2 = vpop.f32.mrb[25].mxu1  ;;  %v1200_v4 = vadd.f32 %v2325_v56, %v2004_v54 }
 0xac8   :  { %v2326_v3 = vpop.f32.mrb[26].mxu1  ;;  %v1192_v7 = vadd.f32 %v2004_v54, %v1191_v2 }
 0xac9   :  { %v1203_v5 = vadd.f32 %v2326_v3, %v2004_v54  ;;  %v1194_v6 = vpop.f32.mrb[27].mxu1 }
 0xaca   :  { %v1195_v8 = vadd.f32 %v2004_v54, %v1194_v6 }
 0xacb   :  { %v1348_v9 = vpack.c.bf16 %v1203_v5, %v1200_v4 }
 0xacc   :  { %v1347_v10 = vpack.c.bf16 %v1195_v8, %v1192_v7 }
 0xacd   :  { %v1363_v22 = vsel %vm309_vm3, %v1348_v9, 0 }
 0xace   :  { %v2329_v11 = vpop.f32.mrb[28].mxu1  ;;  %2425 = vmatprep.subr.msk.bf16.mxu1 %vm309_vm3, %v1347_v10  ;;  %v1360_v12 = vsel %vm309_vm3, %v1347_v10, 0 }
 0xacf   :  { %v1207_v53 = vpop.f32.mrb[29].mxu1  ;;  %2352 = vmatpush3.bf16.xpose.msra.mxu1 %v1360_v12  ;;  %v1216_v14 = vadd.f32 %v2329_v11, %v2004_v54 }
 0xad0   :  { %v2330_v13 = vpop.f32.mrb[30].mxu1  ;;  %2426 = vmatprep.subr.msk.bf16.mxu1 %vm309_vm3, %v1348_v9  ;;  %v1208_v17 = vadd.f32 %v2004_v54, %v1207_v53 }
 0xad1   :  { %v1219_v15 = vadd.f32 %v2330_v13, %v2004_v54  ;;  %v1210_v16 = vpop.f32.mrb[31].mxu1 }
 0xad2   :  { %v1211_v18 = vadd.f32 %v2004_v54, %v1210_v16 }
 0xad3   :  { %v1350_v19 = vpack.c.bf16 %v1219_v15, %v1216_v14 }
 0xad4   :  { %v1349_v20 = vpack.c.bf16 %v1211_v18, %v1208_v17 }
 0xad5   :  { %v1369_v37 = vsel %vm309_vm3, %v1350_v19, 0 }
 0xad6   :  { %v2333_v21 = vpop.f32.mrb[32].mxu1  ;;  %v1366_v36 = vsel %vm309_vm3, %v1349_v20, 0 }
 0xad7   :  { %v1223_v23 = vpop.f32.mrb[33].mxu1  ;;  %2354 = vmatpush3.bf16.xpose.msra.mxu1 %v1363_v22  ;;  %v1232_v25 = vadd.f32 %v2333_v21, %v2004_v54 }
 0xad8   :  { %v2334_v24 = vpop.f32.mrb[34].mxu1  ;;  %2427 = vmatprep.subr.msk.bf16.mxu1 %vm309_vm3, %v1349_v20  ;;  %v1224_v31 = vadd.f32 %v2004_v54, %v1223_v23 }
 0xad9   :  { %v1235_v26 = vadd.f32 %v2334_v24, %v2004_v54  ;;  %v1226_v27 = vpop.f32.mrb[35].mxu1 }
 0xada   :  { %v1227_v32 = vadd.f32 %v2004_v54, %v1226_v27 }
 0xadb   :  { %v1352_v28 = vpack.c.bf16 %v1235_v26, %v1232_v25 }
 0xadc   :  { %v1351_v35 = vpack.c.bf16 %v1227_v32, %v1224_v31 }
 0xadd   :  { %v1375_v39 = vsel %vm309_vm3, %v1352_v28, 0 }
 0xade   :  { %v1372_v38 = vsel %vm309_vm3, %v1351_v35, 0 }
 0xadf   :  { %2356 = vmatpush3.bf16.xpose.msra.mxu1 %v1366_v36  ;;  %v2468_v36 = vld [vmem:[%s3006_s2 + $0x248] sm:$0xff]  }
 0xae0   :  { %2428 = vmatprep.subr.msk.bf16.mxu1 %vm309_vm3, %v1350_v19 }
 0xae7   :  { %2358 = vmatpush3.bf16.xpose.msra.mxu1 %v1369_v37 }
 0xae8   :  { %2429 = vmatprep.subr.msk.bf16.mxu1 %vm309_vm3, %v1351_v35  ;;  %v2467_v35 = vld [vmem:[%s3006_s2 + $0x240] sm:$0xff]  }
 0xaef   :  { %2360 = vmatpush3.bf16.xpose.msra.mxu1 %v1372_v38 }
 0xaf0   :  { %2430 = vmatprep.subr.msk.bf16.mxu1 %vm309_vm3, %v1352_v28 }
 0xaf7   :  { %2362 = vmatpush3.bf16.xpose.msra.mxu1 %v1375_v39 }
 0xaf8   :  { %2411 = vmatprep.subr.bf16.mxu1 %v2517_v0 }
 0xafe   :  { %2364 = vmatmul.mubr.msk.bf16.vlgmr.msra.gmra.mrb[36].mxu1 %vm309_vm3, %v1346_v45 }
 0xaff   :  { %2415 = vmatprep.mubr.msk.bf16.mxu1 %vm2518_vm0, %v2517_v0 }
 0xbd1   :  { %v2365_v46 = vpop.f32.mrb[36].mxu1 }
 0xbd2   :  { %v1411_v47 = vpop.f32.mrb[37].mxu1  ;;  %v1428_v48 = vmul.f32 0.35355338, %v2365_v46 }
 0xbd3   :  { %v1426_v51 = vmul.f32 0.35355338, %v1411_v47  ;;  %v2366_v52 = vpop.f32.mrb[38].mxu1 }
 0xbd4   :  { %v1414_v30 = vpop.f32.mrb[39].mxu1  ;;  %v1429_v55 = vmul.f32 0.35355338, %v2366_v52  ;;  %v1432_v41 = vadd.f32 %v1428_v48, %v2739_v34 }
 0xbd5   :  { %v1427_v58 = vmul.f32 0.35355338, %v1414_v30  ;;  %v1430_v29 = vadd.f32 %v1426_v51, %v2737_v33 }
 0xbd6   :  { %v1433_v40 = vadd.f32 %v1429_v55, %v2747_v49  ;;  %v1440_v56 = vsel %vm242_vm2, %v1432_v41, -inf  ;;  %v2034_v55 = vld [vmem:[%s3009_s3 + $0x13] ss:$0 sm:$0xff] }
 0xbd7   :  { %v1434_v57 = vsel %vm242_vm2, %v1430_v29, -inf  ;;  %v1431_v59 = vadd.f32 %v1427_v58, %v2741_v42 }
 0xbd8   :  { %1435 = vmax.xlane.f32.xlu1 %v1434_v57  ;;  %v1443_v54 = vsel %vm242_vm2, %v1433_v40, -inf }
 0xbd9   :  { %v1437_v60 = vsel %vm242_vm2, %v1431_v59, -inf }
 0xbda   :  { %1438 = vmax.xlane.f32.xlu0 %v1437_v60 }
 0xbdc   :  { %1441 = vmax.xlane.f32.xlu1 %v1440_v56 }
 0xbde   :  { %1444 = vmax.xlane.f32.xlu0 %v1443_v54  ;;  %v2469_v54 = vld [vmem:[%s3006_s2 + $0x270] sm:$0xff]  }
 0xc65   :  { %v1436_v2 = vpop.xlane.xlu1 %1435 }
 0xc66   :  { %v1446_v33 = vsub.f32 %v1430_v29, %v1436_v2  ;;  %v2470_v2 = vld [vmem:[%s3006_s2 + $0x278] sm:$0xff]  }
 0xc67   :  { %v1439_v3 = vpop.xlane.xlu0 %1438 }
 0xc68   :  { %v1450_v4 = vmul.f32 1.442695, %v1446_v33  ;;  %v1447_v5 = vsub.f32 %v1431_v59, %v1439_v3 }
 0xc69   :  { %v1442_v42 = vpop.xlane.xlu1 %1441 }
 0xc6a   :  { %2497 = vpow2.f32 %v1450_v4  ;;  %v1452_v34 = vmul.f32 1.442695, %v1447_v5  ;;  %v1448_v6 = vsub.f32 %v1432_v41, %v1442_v42  ;;  %v2038_v5 = vld [vmem:[%s3009_s3 + $0x16] ss:$0 sm:$0xff] }
 0xc6b   :  { %v1445_v7 = vpop.xlane.xlu0 %1444 }
 0xc6c   :  { %2499 = vpow2.f32 %v1452_v34  ;;  %v1454_v8 = vmul.f32 1.442695, %v1448_v6  ;;  %v1449_v49 = vsub.f32 %v1433_v40, %v1445_v7  ;;  %v2039_v34 = vld [vmem:[%s3009_s3 + $0x17] ss:$0 sm:$0xff] }
 0xc6e   :  { %2501 = vpow2.f32 %v1454_v8  ;;  %v1456_v9 = vmul.f32 1.442695, %v1449_v49  ;;  %v2471_v8 = vld [vmem:[%s3006_s2 + $0x2a0] sm:$0xff]  }
 0xc70   :  { %2503 = vpow2.f32 %v1456_v9  ;;  %v2472_v9 = vld [vmem:[%s3006_s2 + $0x2a8] sm:$0xff]  }
 0xc74   :  { %v2498_v10 = vpop.eup %2497 }
 0xc75   :  { %v1458_v11 = vsel %vm242_vm2, %v2498_v10, 0.0 }
 0xc76   :  { %v2500_v12 = vpop.eup %2499  ;;  %1459 = vadd.xlane.f32.xlu1 %v1458_v11  ;;  %v2474_v11 = vld [vmem:[%s3006_s2 + $0x2b8] sm:$0xff]  }
 0xc77   :  { %v1461_v53 = vsel %vm242_vm2, %v2500_v12, 0.0 }
 0xc78   :  { %v2502_v13 = vpop.eup %2501  ;;  %1462 = vadd.xlane.f32.xlu0 %v1461_v53 }
 0xc79   :  { %v1464_v14 = vsel %vm242_vm2, %v2502_v13, 0.0 }
 0xc7a   :  { %v2504_v15 = vpop.eup %2503  ;;  %1465 = vadd.xlane.f32.xlu1 %v1464_v14 }
 0xc7b   :  { %v1467_v16 = vsel %vm242_vm2, %v2504_v15, 0.0 }
 0xc7c   :  { %1468 = vadd.xlane.f32.xlu0 %v1467_v16 }
 0xd03   :  { %v1460_v17 = vpop.xlane.xlu1 %1459 }
 0xd04   :  { %2505 = vrcp.f32 %v1460_v17 }
 0xd05   :  { %v1463_v18 = vpop.xlane.xlu0 %1462 }
 0xd06   :  { %2507 = vrcp.f32 %v1463_v18 }
 0xd07   :  { %v1466_v19 = vpop.xlane.xlu1 %1465 }
 0xd08   :  { %2509 = vrcp.f32 %v1466_v19  ;;  %v2056_v19 = vld [vmem:[%s3009_s3 + $0x15] ss:$0 sm:$0xff] }
 0xd09   :  { %v1469_v20 = vpop.xlane.xlu0 %1468 }
 0xd0a   :  { %2511 = vrcp.f32 %v1469_v20 }
 0xd0e   :  { %v2506_v21 = vpop.eup %2505 }
 0xd0f   :  { %v1474_v23 = vmul.f32 %v2506_v21, %v2498_v10  ;;  %v2473_v10 = vld [vmem:[%s3006_s2 + $0x2b0] sm:$0xff]  }
 0xd10   :  { %v2508_v22 = vpop.eup %2507 }
 0xd11   :  { %v1475_v24 = vmul.f32 %v2508_v22, %v2500_v12  ;;  %v2044_v12 = vld [vmem:[%s3009_s3 + $0x14] ss:$0 sm:$0xff] }
 0xd12   :  { %v2510_v25 = vpop.eup %2509 }
 0xd13   :  { %v1478_v26 = vpack.c.bf16 %v1475_v24, %v1474_v23  ;;  %v1476_v31 = vmul.f32 %v2510_v25, %v2502_v13 }
 0xd14   :  { %v2512_v27 = vpop.eup %2511 }
 0xd15   :  { %v1477_v32 = vmul.f32 %v2512_v27, %v2504_v15  ;;  %2379 = vmatprep.mubr.msk.bf16.mxu0 %vm242_vm2, %v1478_v26 }
 0xd17   :  { %v1479_v28 = vpack.c.bf16 %v1477_v32, %v1476_v31 }
 0xd19   :  { %2380 = vmatmul.mubr.msk.bf16.vlgmr.msra.gmra.mrb[56].mxu0 %vm242_vm2, %v1479_v28 }
 0xd1a   :  { %2387 = vmatprep.mubr.msk.bf16.mxu0 %vm2518_vm0, %v2517_v0  ;;  %2384 = vmatpush3.bf16.msra.mxu0 %v2467_v35 }
 0xd1b   :  { %2385 = vmatprep.subr.bf16.mxu0 %v2517_v0 }
 0xd1e   :  { %2386 = vmatpush3.bf16.msra.mxu0 %v2468_v36  ;;  %v2475_v36 = vld [vmem:[%s3006_s2 + $0x60] sm:$0xff]  }
 0xd1f   :  { %2391 = vmatprep.subr.bf16.mxu0 %v2517_v0  ;;  %2412 = vmatpush3.bf16.msra.mxu1 %v2475_v36 }
 0xd20   :  { %2413 = vmatprep.subr.bf16.mxu1 %v2517_v0 }
 0xdec   :  { %v2381_v37 = vpop.f32.mrb[56].mxu0 }
 0xded   :  { %v1526_v38 = vpop.f32.mrb[57].mxu0  ;;  %v1543_v46 = vmul.f32 %v2381_v37, %v2684_v62  ;;  %v2476_v37 = vld [vmem:[%s3006_s2 + $0x68] sm:$0xff]  }
 0xdee   :  { %v2382_v39 = vpop.f32.mrb[58].mxu0  ;;  %v1541_v44 = vmul.f32 %v1526_v38, %v2679_v61  ;;  %2414 = vmatpush3.bf16.msra.mxu1 %v2476_v37 }
 0xdef   :  { %v1529_v43 = vpop.f32.mrb[59].mxu0  ;;  %v1544_v48 = vmul.f32 %v2382_v39, %v2696_v1 }
 0xdf0   :  { %v1542_v45 = vmul.f32 %v1529_v43, %v2691_v63 }
 0xdf2   :  { %v1545_v47 = vadd.f32 %v1542_v45, %v1541_v44  ;;  %v2062_v45 = vld [vmem:[%s3009_s3 + $0x18] ss:$0 sm:$0xff] }
 0xdf4   :  { %v1546_v51 = vadd.f32 %v1545_v47, %v1543_v46  ;;  %v2063_v47 = vld [vmem:[%s3009_s3 + $0x19] ss:$0 sm:$0xff] }
 0xdf6   :  { %v1547_v52 = vadd.f32 %v1546_v51, %v1544_v48 }
 0xdf8   :  { %v1553_v30 = vpack.c.bf16 %v1547_v52, %v1547_v52 }
 0xdfa   :  { %2388 = vmatmul.mubr.msk.bf16.vlgmr.msra.gmra.mrb[60].mxu0 %vm309_vm3, %v1553_v30 }
 0xdfb   :  { %2395 = vmatprep.mubr.msk.bf16.mxu0 %vm2518_vm0, %v2517_v0  ;;  %2392 = vmatpush3.bf16.msra.mxu0 %v2469_v54 }
 0xdfc   :  { %2393 = vmatprep.subr.bf16.mxu0 %v2517_v0 }
 0xdff   :  { %2394 = vmatpush3.bf16.msra.mxu0 %v2470_v2 }
 0xe00   :  { %2399 = vmatprep.subr.bf16.mxu0 %v2517_v0 }
 0xecd   :  { %v1608_v61 = vpop.f32.mrb[60].mxu0 }
 0xece   :  { %v1609_v58 = vadd.f32 %v2034_v55, %v1608_v61  ;;  %v2389_v63 = vpop.f32.mrb[61].mxu0 }
 0xecf   :  { %v1611_v29 = vpop.f32.mrb[62].mxu0 }
 0xed0   :  { %v2390_v62 = vpop.f32.mrb[63].mxu0  ;;  %v1614_v57 = vadd.f32 %v1609_v58, %v2861_v50 }
 0xed2   :  { %v1617_v1 = vsel %vm309_vm3, %v1614_v57, 0.0 }
 0xed3   :  { %1618 = vadd.xlane.f32.xlu1 %v1617_v1 }
 0xf60   :  { %v1619_v59 = vpop.xlane.xlu1 %1618 }
 0xf61   :  { %v1620_v41 = vmul.f32 0.03125, %v1619_v59 }
 0xf63   :  { %v1621_v60 = vsub.f32 %v1614_v57, %v1620_v41 }
 0xf65   :  { %v1622_v40 = vmul.f32 %v1621_v60, %v1621_v60 }
 0xf67   :  { %v1623_v56 = vsel %vm309_vm3, %v1622_v40, 0.0 }
 0xf68   :  { %1624 = vadd.xlane.f32.xlu0 %v1623_v56 }
 0xff5   :  { %v1625_v50 = vpop.xlane.xlu0 %1624 }
 0xff6   :  { %v1626_v33 = vmul.f32 0.03125, %v1625_v50 }
 0xff8   :  { %v1627_v3 = vadd.f32 1e-05, %v1626_v33 }
 0xffa   :  { %2513 = vrsqrt.f32 %v1627_v3 }
0x1004   :  { %v2514_v4 = vpop.eup %2513 }
0x1005   :  { %v1629_v42 = vmul.f32 %v2514_v4, %v1621_v60 }
0x1007   :  { %v1634_v6 = vmul.f32 %v2038_v5, %v1629_v42 }
0x1009   :  { %v1639_v7 = vadd.f32 %v2039_v34, %v1634_v6 }
0x100b   :  { %v1645_v49 = vpack.c.bf16 %v1639_v7, %v1639_v7 }
0x100d   :  { %2396 = vmatmul.mubr.msk.bf16.vlgmr.msra.gmra.mrb[64].mxu0 %vm309_vm3, %v1645_v49 }
0x100e   :  { %2400 = vmatpush3.bf16.msra.mxu0 %v2471_v8  ;;  %2407 = vmatprep.mubr.msk.bf16.mxu0 %vm2518_vm0, %v2517_v0 }
0x100f   :  { %2401 = vmatprep.subr.bf16.mxu0 %v2517_v0 }
0x1012   :  { %2402 = vmatpush3.bf16.msra.mxu0 %v2472_v9 }
0x1013   :  { %2403 = vmatprep.subr.bf16.mxu0 %v2517_v0 }
0x1016   :  { %2404 = vmatpush3.bf16.msra.mxu0 %v2473_v10 }
0x1017   :  { %2405 = vmatprep.subr.bf16.mxu0 %v2517_v0  ;;  %v2068_v0 = vld [vmem:[%s3009_s3 + $0x1] ss:$0 sm:$0xff] }
0x101a   :  { %2406 = vmatpush3.bf16.msra.mxu0 %v2474_v11 }
0x10e0   :  { %v1700_v53 = vpop.f32.mrb[64].mxu0 }
0x10e1   :  { %v1701_v13 = vadd.f32 %v2044_v12, %v1700_v53  ;;  %v2397_v14 = vpop.f32.mrb[65].mxu0 }
0x10e2   :  { %v1703_v15 = vpop.f32.mrb[66].mxu0 }
0x10e3   :  { %v1706_v16 = vmax.f32 %v1701_v13, 0.0  ;;  %v2398_v17 = vpop.f32.mrb[67].mxu0 }
0x10e5   :  { %v1716_v18 = vpack.c.bf16 %v1706_v16, %v1706_v16 }
0x10e7   :  { %2408 = vmatmul.mubr.msk.bf16.vlgmr.msra.gmra.mrb[68].mxu0 %vm999_vm5, %v1716_v18 }
0x11ba   :  { %v1783_v20 = vpop.f32.mrb[68].mxu0 }
0x11bb   :  { %v1784_v21 = vadd.f32 %v2056_v19, %v1783_v20  ;;  %v2409_v22 = vpop.f32.mrb[69].mxu0 }
0x11bc   :  { %v1786_v23 = vpop.f32.mrb[70].mxu0 }
0x11bd   :  { %v2410_v24 = vpop.f32.mrb[71].mxu0  ;;  %v1789_v25 = vadd.f32 %v1784_v21, %v1639_v7 }
0x11bf   :  { %v1792_v26 = vsel %vm309_vm3, %v1789_v25, 0.0 }
0x11c0   :  { %1793 = vadd.xlane.f32.xlu1 %v1792_v26 }
0x124d   :  { %v1794_v27 = vpop.xlane.xlu1 %1793 }
0x124e   :  { %v1795_v31 = vmul.f32 0.03125, %v1794_v27 }
0x1250   :  { %v1796_v32 = vsub.f32 %v1789_v25, %v1795_v31 }
0x1252   :  { %v1797_v28 = vmul.f32 %v1796_v32, %v1796_v32 }
0x1254   :  { %v1798_v35 = vsel %vm309_vm3, %v1797_v28, 0.0 }
0x1255   :  { %1799 = vadd.xlane.f32.xlu0 %v1798_v35 }
0x12e2   :  { %v1800_v38 = vpop.xlane.xlu0 %1799 }
0x12e3   :  { %v1801_v39 = vmul.f32 0.03125, %v1800_v38 }
0x12e5   :  { %v1802_v43 = vadd.f32 1e-05, %v1801_v39 }
0x12e7   :  { %2515 = vrsqrt.f32 %v1802_v43 }
0x12f1   :  { %v2516_v44 = vpop.eup %2515 }
0x12f2   :  { %v1804_v46 = vmul.f32 %v2516_v44, %v1796_v32 }
0x12f4   :  { %v1809_v48 = vmul.f32 %v2062_v45, %v1804_v46 }
0x12f6   :  { %v1814_v51 = vadd.f32 %v2063_v47, %v1809_v48 }
0x12f8   :  { %v1820_v52 = vpack.c.bf16 %v1814_v51, %v1814_v51 }
0x12fa   :  { %2416 = vmatmul.mubr.msk.bf16.vlgmr.msra.gmra.mrb[40].mxu1 %vm309_vm3, %v1820_v52 }
0x13cd   :  { %v1875_v30 = vpop.f32.mrb[40].mxu1 }
0x13ce   :  { %v1876_v55 = vadd.f32 %v2068_v0, %v1875_v30  ;;  %v2417_v61 = vpop.f32.mrb[41].mxu1 }
0x13cf   :  { %v1878_v58 = vpop.f32.mrb[42].mxu1 }
0x13d0   :  { %1882 = vst.msk [vmem:[%s3011_s5] sm:$0xff] %vm1881_vm6, %v1876_v55  ;;  %v2418_v63 = vpop.f32.mrb[43].mxu1 }

</bundles_post_ra>
